<compile_context>
chip_gen: v6e
topology: v6e:2x2x1
jax: 0.10.0
libtpu: 0.0.40
codegen_flags: <defaults>
</compile_context>

<pallas_src>
import math

import jax
import jax.numpy as jnp
import numpy as np
from jax.experimental import pallas as pl
from jax.experimental.pallas import tpu as pltpu

# ---- problem sizes (small, consistent with the module) ----
J = 16        # num_joints (H36M-style 16-joint skeleton)
C_IN = 2      # input feature dim
C_OUT = 32    # output feature dim
B = 2
T = 8
N = B * T


# ----------------------------- kernel -----------------------------
def _local_graph_kernel(aux_ref, a_sym_ref, a_con_ref, pvec_ref, wcat_ref, o_ref):
    nj, cout = o_ref.shape              # (N*J, C_OUT)
    n, j, _ = a_sym_ref.shape           # (N, J, J)

    aux = aux_ref[...]                  # (N*J, 8): [x0,x1,ds*x0,ds*x1,dc*x0,dc*x1,0,0]
    p = pvec_ref[...]                   # (8, 2*C_OUT) packed folded params

    x0 = aux[:, 0:1]
    x1 = aux[:, 1:2]

    # K=2 projection for the off-diagonal branch, both graphs lane-packed:
    # h1p = [h1_sym | h1_con], 2 multiplies + 1 add on 64-lane vregs (VPU only).
    h1p = x0 * p[0:1, :] + x1 * p[1:2, :]                       # (N*J, 2C)

    # Off-diagonal adjacency term: batched per-graph matmul with the shared
    # (J, J) off-diagonal softmax adjacency (no block-diagonal materialization).
    h1s = h1p[:, :cout].reshape(n, j, cout)
    h1c = h1p[:, cout:].reshape(n, j, cout)
    off_s = jnp.einsum('njk,nkc->njc', a_sym_ref[...], h1s,
                       preferred_element_type=jnp.float32)
    off_c = jnp.einsum('njk,nkc->njc', a_con_ref[...], h1c,
                       preferred_element_type=jnp.float32)
    offp = jnp.concatenate([off_s.reshape(nj, cout),
                            off_c.reshape(nj, cout)], axis=1)   # (N*J, 2C)

    # Diagonal term: the softmax diagonal is already folded into the
    # pre-scaled inputs (aux columns 2..5); branch bias (BN folded) + ReLU,
    # all on packed 64-lane vregs.
    diagp = (aux[:, 2:3] * p[2:3, :] + aux[:, 3:4] * p[3:4, :] +
             aux[:, 4:5] * p[4:5, :] + aux[:, 5:6] * p[5:6, :])
    xsc = jnp.maximum(diagp + offp + p[6:7, :], 0.0)            # (N*J, 2C) = [xs|xc]

    # concat + 1x1 conv (BN3 scale folded into wcat): ONE (N*J,2C)@(2C,C) dot,
    # BN3 shift as bias, final ReLU.
    fused = jnp.dot(xsc, wcat_ref[...], preferred_element_type=jnp.float32)
    o_ref[...] = jnp.maximum(fused + p[7:8, :cout], 0.0).astype(o_ref.dtype)


# -------------------- one-time constant folding (outside jit) --------------------
def fold_local_graph_params(params, n):
    """Runs ONCE per parameter set (never inside the jitted forward)."""
    (asym_l, acon_l, w_sym, w_con, b_sym, b_con,
     bn1s, bn1b, bn2s, bn2b, w_cat, bn3s, bn3b) = params
    j = asym_l.shape[0]
    cout = w_sym.shape[-1]

    def prep_adj(logits):
        adj = jax.nn.softmax(logits, axis=1)                    # (J, J)
        eye = jnp.eye(j, dtype=adj.dtype)
        diag = jnp.sum(adj * eye, axis=1, keepdims=True)        # (J, 1)
        off = adj * (1.0 - eye)                                 # (J, J)
        off_b = jnp.broadcast_to(off[None], (n, j, j))          # (N, J, J) ~16 KiB
        return jnp.asarray(off_b, jnp.float32), diag

    asym_b, dsym = prep_adj(asym_l)
    acon_b, dcon = prep_adj(acon_l)
    diag_pack = jnp.concatenate([dsym, dcon], axis=1).astype(jnp.float32)   # (J, 2)

    # Fold eval-mode BatchNorms into adjacent weights / biases.
    w_sym_f = w_sym * bn1s.reshape(1, 1, cout)
    w_con_f = w_con * bn2s.reshape(1, 1, cout)
    b_sym_f = (b_sym * bn1s + bn1b).reshape(cout)
    b_con_f = (b_con * bn2s + bn2b).reshape(cout)
    w_cat_f = (w_cat * bn3s).astype(jnp.float32)                # (2C, C)
    b_cat_f = bn3b.reshape(cout)

    z = jnp.zeros((cout,), jnp.float32)
    pvec = jnp.stack([
        jnp.concatenate([w_sym_f[1, 0], w_con_f[1, 0]]),        # x0 -> [h1_sym|h1_con]
        jnp.concatenate([w_sym_f[1, 1], w_con_f[1, 1]]),        # x1 -> [h1_sym|h1_con]
        jnp.concatenate([w_sym_f[0, 0], z]),                    # ds*x0 -> diag sym
        jnp.concatenate([w_sym_f[0, 1], z]),                    # ds*x1 -> diag sym
        jnp.concatenate([z, w_con_f[0, 0]]),                    # dc*x0 -> diag con
        jnp.concatenate([z, w_con_f[0, 1]]),                    # dc*x1 -> diag con
        jnp.concatenate([b_sym_f, b_con_f]),                    # packed branch bias
        jnp.concatenate([b_cat_f, z]),                          # cat bias (first C lanes)
    ], axis=0).astype(jnp.float32)                              # (8, 2C)

    return dict(asym_b=asym_b, acon_b=acon_b, diag=diag_pack,
                pvec=pvec, wcat=w_cat_f)


# ----------------------------- jitted forward -----------------------------
def local_graph_forward(x, folded):
    b, t, j, cin = x.shape
    assert cin == 2, "LocalGraph kernel is specialized to 2-channel input"
    n = b * t
    cout = folded["wcat"].shape[-1]

    # Per-call aux operand: diag scaling folded in (cheap XLA elementwise ops).
    x_nj = x.reshape(n, j, cin).astype(jnp.float32)
    x0 = x_nj[..., 0]                                           # (N, J)
    x1 = x_nj[..., 1]
    ds = folded["diag"][:, 0][None, :]                          # (1, J)
    dc = folded["diag"][:, 1][None, :]
    zero = jnp.zeros_like(x0)
    aux = jnp.stack([x0, x1, ds * x0, ds * x1, dc * x0, dc * x1, zero, zero],
                    axis=-1).reshape(n * j, 8)                  # (N*J, 8)

    # Single invocation (no grid): whole working set (<100 KiB) is VMEM-resident.
    # (On v7x a 2-way parallel grid over graphs could use both TCs, but at
    #  B*T*J = 256 rows the per-step overhead eats the gain; kept gridless.)
    out = pl.pallas_call(
        _local_graph_kernel,
        out_shape=jax.ShapeDtypeStruct((n * j, cout), jnp.float32),
        in_specs=[pl.BlockSpec(memory_space=pltpu.MemorySpace.VMEM)] * 5,
        out_specs=pl.BlockSpec(memory_space=pltpu.MemorySpace.VMEM),
        cost_estimate=pl.CostEstimate(flops=2_100_000, transcendentals=0,
                                      bytes_accessed=90_000),
    )(aux, folded["asym_b"], folded["acon_b"], folded["pvec"], folded["wcat"])
    return out.reshape(b, t, j, cout)


# -------------------- init-time glue (mirrors __init__) --------------------
def build_graph_params():
    parents = [-1, 0, 1, 2, 0, 4, 5, 0, 7, 8, 8, 10, 11, 8, 13, 14]
    adj = np.eye(J, dtype=np.float32)
    for c, p in enumerate(parents):
        if p >= 0:
            adj[c, p] = 1.0
            adj[p, c] = 1.0

    distal_joints = [3, 6, 9, 12, 15]
    joints_left = [4, 5, 6, 10, 11, 12]
    joints_right = [1, 2, 3, 13, 14, 15]

    adj_sym = np.zeros_like(adj)
    for i in range(J):
        adj_sym[i, i] = 1.0
        if i in joints_left:
            adj_sym[i, joints_right[joints_left.index(i)]] = 1.0
        if i in joints_right:
            adj_sym[i, joints_left[joints_right.index(i)]] = 1.0

    adj_1st = adj.copy()
    adj_1st[distal_joints, :] = 0.0
    adj_2nd = adj @ adj
    non_distal = [i for i in range(J) if i not in distal_joints]
    adj_2nd[non_distal, :] = 0.0
    adj_con = adj_1st + adj_2nd
    return adj_sym > 0, adj_con > 0


def masked_logits(mask, e_vals):
    out = np.full((J, J), -9e15, dtype=np.float32)
    r, c = np.nonzero(mask)             # row-major order, matches torch bool indexing
    out[r, c] = e_vals
    return jnp.asarray(out)


# ----------------------------- pure-JAX reference -----------------------------
def reference(x, params):
    (asym_l, acon_l, w_sym, w_con, b_sym, b_con,
     bn1s, bn1b, bn2s, bn2b, w_cat, bn3s, bn3b) = params

    def sem(adj_l, W, bias):
        adj_sm = jax.nn.softmax(adj_l, axis=1)
        Mi = jnp.eye(J, dtype=jnp.float32)
        h0 = x @ W[0]
        h1 = x @ W[1]
        out = jnp.matmul(adj_sm * Mi, h0) + jnp.matmul(adj_sm * (1.0 - Mi), h1)
        return out + bias.reshape(1, 1, 1, -1)

    xs = jnp.maximum(sem(asym_l, w_sym, b_sym) * bn1s + bn1b, 0.0)
    xc = jnp.maximum(sem(acon_l, w_con, b_con) * bn2s + bn2b, 0.0)
    cat = jnp.concatenate([xs, xc], axis=-1)
    out = cat @ w_cat
    return jnp.maximum(out * bn3s + bn3b, 0.0)


if __name__ == "__main__":
    key = jax.random.PRNGKey(0)
    k = jax.random.split(key, 10)

    mask_sym, mask_con = build_graph_params()
    e_sym = np.ones(int(mask_sym.sum()), dtype=np.float32)   # nn.init.constant_(e, 1)
    e_con = np.ones(int(mask_con.sum()), dtype=np.float32)
    asym_l = masked_logits(mask_sym, e_sym)
    acon_l = masked_logits(mask_con, e_con)

    gain = 1.414
    a_w = gain * math.sqrt(6.0 / (C_IN + C_OUT))
    w_sym = jax.random.uniform(k[0], (2, C_IN, C_OUT), jnp.float32, -a_w, a_w)
    w_con = jax.random.uniform(k[1], (2, C_IN, C_OUT), jnp.float32, -a_w, a_w)
    stdv = 1.0 / math.sqrt(C_OUT)
    b_sym = jax.random.uniform(k[2], (1, C_OUT), jnp.float32, -stdv, stdv)
    b_con = jax.random.uniform(k[3], (1, C_OUT), jnp.float32, -stdv, stdv)

    def bn_fold(kk):
        kg, kb, km, kv = jax.random.split(kk, 4)
        gamma = jax.random.uniform(kg, (1, C_OUT), jnp.float32, 0.5, 1.5)
        beta = 0.1 * jax.random.normal(kb, (1, C_OUT), jnp.float32)
        mean = 0.1 * jax.random.normal(km, (1, C_OUT), jnp.float32)
        var = jax.random.uniform(kv, (1, C_OUT), jnp.float32, 0.5, 1.5)
        scale = gamma / jnp.sqrt(var + 1e-5)
        shift = beta - mean * scale
        return scale, shift

    bn1s, bn1b = bn_fold(k[4])
    bn2s, bn2b = bn_fold(k[5])
    bn3s, bn3b = bn_fold(k[6])

    bound = 1.0 / math.sqrt(2 * C_OUT)
    w_conv = jax.random.uniform(k[7], (C_OUT, 2 * C_OUT), jnp.float32, -bound, bound)
    w_cat = w_conv.T                                   # (2*C_OUT, C_OUT) channel-last matmul

    x = jax.random.normal(k[8], (B, T, J, C_IN), jnp.float32)

    params = (asym_l, acon_l, w_sym, w_con, b_sym, b_con,
              bn1s, bn1b, bn2s, bn2b, w_cat, bn3s, bn3b)

    # One-time constant fold (outside the jitted per-call path).
    folded = fold_local_graph_params(params, B * T)
    folded = jax.tree_util.tree_map(jax.block_until_ready, folded)

    fwd = jax.jit(local_graph_forward)
    out = fwd(x, folded)
    jax.block_until_ready(out)

    ref = reference(x, params)
    assert out.shape == (B, T, J, C_OUT)
    assert jnp.allclose(out, ref, atol=1e-4, rtol=1e-4), float(jnp.abs(out - ref).max())
    print("KERNEL_OK")
</pallas_src>

<mosaic_0001>
module attributes {stable_mosaic.version = 11 : i64} {
  func.func @_local_graph_kernel(%arg0: memref<256x8xf32, #tpu.memory_space<vmem>>, %arg1: memref<16x16x16xf32, #tpu.memory_space<vmem>>, %arg2: memref<16x16x16xf32, #tpu.memory_space<vmem>>, %arg3: memref<8x64xf32, #tpu.memory_space<vmem>>, %arg4: memref<64x32xf32, #tpu.memory_space<vmem>>, %arg5: memref<256x32xf32, #tpu.memory_space<vmem>>) attributes {dimension_semantics = [], scalar_prefetch = 0 : i64, scratch_operands = 0 : i64, tpu.core_type = #tpu.core_type<tc>} {
    %c0 = arith.constant 0 : index
    %c0_0 = arith.constant 0 : index
    %0 = vector.load %arg0[%c0, %c0_0] : memref<256x8xf32, #tpu.memory_space<vmem>>, vector<256x8xf32>
    %c0_1 = arith.constant 0 : index
    %c0_2 = arith.constant 0 : index
    %1 = vector.load %arg3[%c0_1, %c0_2] : memref<8x64xf32, #tpu.memory_space<vmem>>, vector<8x64xf32>
    %2 = vector.extract_strided_slice %0 {offsets = [0, 0], sizes = [256, 1], strides = [1, 1]} : vector<256x8xf32> to vector<256x1xf32>
    %3 = vector.extract_strided_slice %0 {offsets = [0, 1], sizes = [256, 1], strides = [1, 1]} : vector<256x8xf32> to vector<256x1xf32>
    %4 = vector.extract_strided_slice %1 {offsets = [0, 0], sizes = [1, 64], strides = [1, 1]} : vector<8x64xf32> to vector<1x64xf32>
    %5 = vector.broadcast %2 : vector<256x1xf32> to vector<256x64xf32>
    %6 = vector.broadcast %4 : vector<1x64xf32> to vector<256x64xf32>
    %7 = arith.mulf %5, %6 : vector<256x64xf32>
    %8 = vector.extract_strided_slice %1 {offsets = [1, 0], sizes = [1, 64], strides = [1, 1]} : vector<8x64xf32> to vector<1x64xf32>
    %9 = vector.broadcast %3 : vector<256x1xf32> to vector<256x64xf32>
    %10 = vector.broadcast %8 : vector<1x64xf32> to vector<256x64xf32>
    %11 = arith.mulf %9, %10 : vector<256x64xf32>
    %12 = arith.addf %7, %11 : vector<256x64xf32>
    %13 = vector.extract_strided_slice %12 {offsets = [0, 0], sizes = [256, 32], strides = [1, 1]} : vector<256x64xf32> to vector<256x32xf32>
    %14 = vector.shape_cast %13 : vector<256x32xf32> to vector<16x16x32xf32>
    %15 = vector.extract_strided_slice %12 {offsets = [0, 32], sizes = [256, 32], strides = [1, 1]} : vector<256x64xf32> to vector<256x32xf32>
    %16 = vector.shape_cast %15 : vector<256x32xf32> to vector<16x16x32xf32>
    %c0_3 = arith.constant 0 : index
    %c0_4 = arith.constant 0 : index
    %c0_5 = arith.constant 0 : index
    %17 = vector.load %arg1[%c0_3, %c0_4, %c0_5] : memref<16x16x16xf32, #tpu.memory_space<vmem>>, vector<16x16x16xf32>
    "tpu.trace_start"() <{level = 10 : i32, message = "njk,nkc->njc"}> : () -> ()
    %cst = arith.constant dense<0.000000e+00> : vector<16x16x32xf32>
    %18 = tpu.matmul %17, %14, %cst {dimension_numbers = #tpu.dot_dimension_numbers<[2], [1], [1], [2], [0, 0, 0, 1, 1, 2], [0], [0]>} : vector<16x16x16xf32>, vector<16x16x32xf32>, vector<16x16x32xf32> -> vector<16x16x32xf32>
    "tpu.trace_stop"() : () -> ()
    %c0_6 = arith.constant 0 : index
    %c0_7 = arith.constant 0 : index
    %c0_8 = arith.constant 0 : index
    %19 = vector.load %arg2[%c0_6, %c0_7, %c0_8] : memref<16x16x16xf32, #tpu.memory_space<vmem>>, vector<16x16x16xf32>
    "tpu.trace_start"() <{level = 10 : i32, message = "njk,nkc->njc"}> : () -> ()
    %cst_9 = arith.constant dense<0.000000e+00> : vector<16x16x32xf32>
    %20 = tpu.matmul %19, %16, %cst_9 {dimension_numbers = #tpu.dot_dimension_numbers<[2], [1], [1], [2], [0, 0, 0, 1, 1, 2], [0], [0]>} : vector<16x16x16xf32>, vector<16x16x32xf32>, vector<16x16x32xf32> -> vector<16x16x32xf32>
    "tpu.trace_stop"() : () -> ()
    %21 = vector.shape_cast %18 : vector<16x16x32xf32> to vector<256x32xf32>
    %22 = vector.shape_cast %20 : vector<16x16x32xf32> to vector<256x32xf32>
    %23 = tpu.concatenate %21, %22 in 1 : vector<256x32xf32>, vector<256x32xf32> -> vector<256x64xf32>
    %24 = vector.extract_strided_slice %0 {offsets = [0, 2], sizes = [256, 1], strides = [1, 1]} : vector<256x8xf32> to vector<256x1xf32>
    %25 = vector.extract_strided_slice %1 {offsets = [2, 0], sizes = [1, 64], strides = [1, 1]} : vector<8x64xf32> to vector<1x64xf32>
    %26 = vector.broadcast %24 : vector<256x1xf32> to vector<256x64xf32>
    %27 = vector.broadcast %25 : vector<1x64xf32> to vector<256x64xf32>
    %28 = arith.mulf %26, %27 : vector<256x64xf32>
    %29 = vector.extract_strided_slice %0 {offsets = [0, 3], sizes = [256, 1], strides = [1, 1]} : vector<256x8xf32> to vector<256x1xf32>
    %30 = vector.extract_strided_slice %1 {offsets = [3, 0], sizes = [1, 64], strides = [1, 1]} : vector<8x64xf32> to vector<1x64xf32>
    %31 = vector.broadcast %29 : vector<256x1xf32> to vector<256x64xf32>
    %32 = vector.broadcast %30 : vector<1x64xf32> to vector<256x64xf32>
    %33 = arith.mulf %31, %32 : vector<256x64xf32>
    %34 = arith.addf %28, %33 : vector<256x64xf32>
    %35 = vector.extract_strided_slice %0 {offsets = [0, 4], sizes = [256, 1], strides = [1, 1]} : vector<256x8xf32> to vector<256x1xf32>
    %36 = vector.extract_strided_slice %1 {offsets = [4, 0], sizes = [1, 64], strides = [1, 1]} : vector<8x64xf32> to vector<1x64xf32>
    %37 = vector.broadcast %35 : vector<256x1xf32> to vector<256x64xf32>
    %38 = vector.broadcast %36 : vector<1x64xf32> to vector<256x64xf32>
    %39 = arith.mulf %37, %38 : vector<256x64xf32>
    %40 = arith.addf %34, %39 : vector<256x64xf32>
    %41 = vector.extract_strided_slice %0 {offsets = [0, 5], sizes = [256, 1], strides = [1, 1]} : vector<256x8xf32> to vector<256x1xf32>
    %42 = vector.extract_strided_slice %1 {offsets = [5, 0], sizes = [1, 64], strides = [1, 1]} : vector<8x64xf32> to vector<1x64xf32>
    %43 = vector.broadcast %41 : vector<256x1xf32> to vector<256x64xf32>
    %44 = vector.broadcast %42 : vector<1x64xf32> to vector<256x64xf32>
    %45 = arith.mulf %43, %44 : vector<256x64xf32>
    %46 = arith.addf %40, %45 : vector<256x64xf32>
    %47 = arith.addf %46, %23 : vector<256x64xf32>
    %48 = vector.extract_strided_slice %1 {offsets = [6, 0], sizes = [1, 64], strides = [1, 1]} : vector<8x64xf32> to vector<1x64xf32>
    %49 = vector.broadcast %48 : vector<1x64xf32> to vector<256x64xf32>
    %50 = arith.addf %47, %49 : vector<256x64xf32>
    %cst_10 = arith.constant 0.000000e+00 : f32
    %51 = vector.broadcast %cst_10 : f32 to vector<256x64xf32>
    %52 = arith.maximumf %50, %51 : vector<256x64xf32>
    %c0_11 = arith.constant 0 : index
    %c0_12 = arith.constant 0 : index
    %53 = vector.load %arg4[%c0_11, %c0_12] : memref<64x32xf32, #tpu.memory_space<vmem>>, vector<64x32xf32>
    %cst_13 = arith.constant dense<0.000000e+00> : vector<256x32xf32>
    %54 = tpu.matmul %52, %53, %cst_13 {dimension_numbers = #tpu.dot_dimension_numbers<[1], [0], [0], [1], [0, 0, 1, 1], [], []>} : vector<256x64xf32>, vector<64x32xf32>, vector<256x32xf32> -> vector<256x32xf32>
    %55 = vector.extract_strided_slice %1 {offsets = [7, 0], sizes = [1, 32], strides = [1, 1]} : vector<8x64xf32> to vector<1x32xf32>
    %56 = vector.broadcast %55 : vector<1x32xf32> to vector<256x32xf32>
    %57 = arith.addf %54, %56 : vector<256x32xf32>
    %cst_14 = arith.constant 0.000000e+00 : f32
    %58 = vector.broadcast %cst_14 : f32 to vector<256x32xf32>
    %59 = arith.maximumf %57, %58 : vector<256x32xf32>
    %c0_15 = arith.constant 0 : index
    %c0_16 = arith.constant 0 : index
    %60 = vector.load %arg5[%c0_15, %c0_16] : memref<256x32xf32, #tpu.memory_space<vmem>>, vector<256x32xf32>
    tpu.vector_store %arg5[%c0_15, %c0_16], %59 {strides = array<i32>} : memref<256x32xf32, #tpu.memory_space<vmem>>, vector<256x32xf32>,
    return
  }
}

</mosaic_0001>

<bundles_post_ra>
// kernel: local_graph_forward.1
= control target key start
LH: loop header
LB: loop body
LE: loop exit
PB: predicated region body
PF: predicated region fallthrough
CT: control target
= control target key end

     0   :  { %v5334_v2 = vmov 0   ;;  %s7230_s0 = inlined_call_operand.vmem [shape: f32[256,8], index: 0, kind: input, shape index: {}]   ;;  %s7231_s1 = inlined_call_operand.vmem [shape: f32[16,16,16], index: 1, kind: input, shape index: {}]   ;;  %s7232_s2 = inlined_call_operand.vmem [shape: f32[16,16,16], index: 2, kind: input, shape index: {}]   ;;  %s7233_s3 = inlined_call_operand.vmem [shape: f32[8,64], index: 3, kind: input, shape index: {}]   ;;  %s7234_s4 = inlined_call_operand.vmem [shape: f32[64,32], index: 4, kind: input, shape index: {}]   ;;  %s7235_s5 = inlined_call_operand.hbm [shape: f32[256,32], index: 5, kind: output, shape index: {}]  }
   0x1   :  { %v5378_v0 = vld [vmem:[%s7230_s0 + $0x10] sm:$0xff]  ;;  %v5383_v1 = vld [vmem:[%s7230_s0] sm:$0xff]  ;;  %5238 = vset.pattern.permute.xlu1 %v5334_v2  ;;  %5237 = vset.pattern.permute.xlu0 %v5334_v2  ;;  %v5390_v3 = vld [vmem:[%s7230_s0 + $0x18] sm:$0xff] }
   0x2   :  { %66 = vperm.xlu1 %5238, %v5378_v0   ;;  %56 = vperm.xlu0 %5237, %v5383_v1   ;;  %v5395_v4 = vld [vmem:[%s7230_s0 + $0x8] sm:$0xff]  ;;  %v5407_v6 = vld [vmem:[%s7230_s0 + $0x20] sm:$0xff]  ;;  %v5414_v7 = vld [vmem:[%s7230_s0 + $0x38] sm:$0xff] }
   0x3   :  { %v5402_v5 = vld [vmem:[%s7230_s0 + $0x28] sm:$0xff]  ;;  %v5419_v8 = vld [vmem:[%s7230_s0 + $0x30] sm:$0xff] }
   0x6   :  { %71 = vperm.xlu1 %5238, %v5390_v3   ;;  %61 = vperm.xlu0 %5237, %v5395_v4  }
   0xa   :  { %81 = vperm.xlu1 %5238, %v5402_v5   ;;  %76 = vperm.xlu0 %5237, %v5407_v6  }
   0xb   :  { %10 = vsyncpa [#allocation3], 0  ;;  %v5426_v9 = vld [vmem:[%s7230_s0 + $0x48] sm:$0xff]  ;;  %v5431_v10 = vld [vmem:[%s7230_s0 + $0x40] sm:$0xff]  ;;  %v5335_v33 = vmov 1   ;;  %vm478_vm0 = vcmask 130048   ;;  %v214_v63 = vlaneseq }
   0xc   :  { %v5438_v11 = vld [vmem:[%s7230_s0 + $0x58] sm:$0xff]  ;;  %v5443_v12 = vld [vmem:[%s7230_s0 + $0x50] sm:$0xff]  ;;  %v5450_v13 = vld [vmem:[%s7230_s0 + $0x68] sm:$0xff]  ;;  %v5336_v40 = vmov 2   ;;  %s5337_s13 = smov 96   ;;  %s5341_s12 = smov 32  }
   0xd   :  { %v5455_v14 = vld [vmem:[%s7230_s0 + $0x60] sm:$0xff]  ;;  %v5462_v15 = vld [vmem:[%s7230_s0 + $0x78] sm:$0xff]  ;;  %v5467_v16 = vld [vmem:[%s7230_s0 + $0x70] sm:$0xff]  ;;  %vm3359_vm1 = vcmask 261120   ;;  %vm4256_vm2 = vcmask 523264  }
   0xe   :  { %91 = vperm.xlu1 %5238, %v5414_v7   ;;  %86 = vperm.xlu0 %5237, %v5419_v8   ;;  %7263 = vst [vmem:[#allocation5_spill] sm:$0xff] %v5462_v15  ;;  %v5474_v17 = vld [vmem:[%s7230_s0 + $0x88] sm:$0xff]  ;;  %v5479_v18 = vld [vmem:[%s7230_s0 + $0x80] sm:$0xff]  ;;  %v5486_v19 = vld [vmem:[%s7230_s0 + $0x98] sm:$0xff] }
   0xf   :  { %7264 = vst [vmem:[#allocation6_spill] sm:$0xff] %v5474_v17  ;;  %7265 = vst [vmem:[#allocation7_spill] sm:$0xff] %v5486_v19  ;;  %v5491_v20 = vld [vmem:[%s7230_s0 + $0x90] sm:$0xff]  ;;  %v5498_v21 = vld [vmem:[%s7230_s0 + $0xa8] sm:$0xff] }
  0x10   :  { %7266 = vst [vmem:[#allocation8_spill] sm:$0xff] %v5491_v20  ;;  %7267 = vst [vmem:[#allocation9_spill] sm:$0xff] %v5498_v21  ;;  %v5503_v22 = vld [vmem:[%s7230_s0 + $0xa0] sm:$0xff]  ;;  %v5510_v23 = vld [vmem:[%s7230_s0 + $0xb8] sm:$0xff] }
  0x11   :  { %7268 = vst [vmem:[#allocation10_spill] sm:$0xff] %v5503_v22  ;;  %7269 = vst [vmem:[#allocation11_spill] sm:$0xff] %v5510_v23  ;;  %v5515_v24 = vld [vmem:[%s7230_s0 + $0xb0] sm:$0xff]  ;;  %v5522_v25 = vld [vmem:[%s7230_s0 + $0xc8] sm:$0xff] }
  0x12   :  { %101 = vperm.xlu1 %5238, %v5426_v9   ;;  %96 = vperm.xlu0 %5237, %v5431_v10   ;;  %7270 = vst [vmem:[#allocation12_spill] sm:$0xff] %v5515_v24  ;;  %7271 = vst [vmem:[#allocation13_spill] sm:$0xff] %v5522_v25  ;;  %v5527_v26 = vld [vmem:[%s7230_s0 + $0xc0] sm:$0xff]  ;;  %v5534_v27 = vld [vmem:[%s7230_s0 + $0xd8] sm:$0xff] }
  0x13   :  { %7272 = vst [vmem:[#allocation14_spill] sm:$0xff] %v5527_v26  ;;  %7273 = vst [vmem:[#allocation15_spill] sm:$0xff] %v5534_v27  ;;  %v5539_v28 = vld [vmem:[%s7230_s0 + $0xd0] sm:$0xff]  ;;  %v5546_v29 = vld [vmem:[%s7230_s0 + $0xe8] sm:$0xff] }
  0x14   :  { %7274 = vst [vmem:[#allocation16_spill] sm:$0xff] %v5539_v28  ;;  %7275 = vst [vmem:[#allocation17_spill] sm:$0xff] %v5546_v29  ;;  %v5551_v30 = vld [vmem:[%s7230_s0 + $0xe0] sm:$0xff]  ;;  %v5558_v31 = vld [vmem:[%s7230_s0 + $0xf8] sm:$0xff] }
  0x15   :  { %7276 = vst [vmem:[#allocation18_spill] sm:$0xff] %v5551_v30  ;;  %7277 = vst [vmem:[#allocation19_spill] sm:$0xff] %v5558_v31  ;;  %v5563_v32 = vld [vmem:[%s7230_s0 + $0xf0] sm:$0xff]  ;;  %v446_v34 = vld [vmem:[%s7231_s1] sm:$0xff] }
  0x16   :  { %111 = vperm.xlu1 %5238, %v5438_v11   ;;  %106 = vperm.xlu0 %5237, %v5443_v12   ;;  %7278 = vst [vmem:[#allocation20_spill] sm:$0xff] %v5563_v32  ;;  %v448_v35 = vld [vmem:[%s7231_s1 + $0x10] sm:$0xff] }
  0x17   :  { %4926 = vmatprep.mubr.msk.f32.mxu0 %vm478_vm0, %v446_v34  ;;  %4933 = vmatprep.mubr.msk.f32.mxu1 %vm478_vm0, %v448_v35  ;;  %v5651_v34 = vshrl.u32 %v214_v63, 7 }
  0x19   :  { %7279 = vst [vmem:[#allocation21_spill] sm:$0xff] %v5651_v34 }
  0x1a   :  { %121 = vperm.xlu1 %5238, %v5450_v13   ;;  %116 = vperm.xlu0 %5237, %v5455_v14  }
  0x1e   :  { %131 = vperm.xlu1 %5238, %v5462_v15   ;;  %126 = vperm.xlu0 %5237, %v5467_v16  }
  0x22   :  { %141 = vperm.xlu1 %5238, %v5474_v17   ;;  %136 = vperm.xlu0 %5237, %v5479_v18  }
  0x26   :  { %151 = vperm.xlu1 %5238, %v5486_v19   ;;  %146 = vperm.xlu0 %5237, %v5491_v20  }
  0x2a   :  { %161 = vperm.xlu1 %5238, %v5498_v21   ;;  %156 = vperm.xlu0 %5237, %v5503_v22  }
  0x2e   :  { %171 = vperm.xlu1 %5238, %v5510_v23   ;;  %166 = vperm.xlu0 %5237, %v5515_v24  }
  0x32   :  { %181 = vperm.xlu1 %5238, %v5522_v25   ;;  %176 = vperm.xlu0 %5237, %v5527_v26  }
  0x36   :  { %191 = vperm.xlu1 %5238, %v5534_v27   ;;  %186 = vperm.xlu0 %5237, %v5539_v28  }
  0x3a   :  { %201 = vperm.xlu1 %5238, %v5546_v29   ;;  %196 = vperm.xlu0 %5237, %v5551_v30  }
  0x3e   :  { %211 = vperm.xlu1 %5238, %v5558_v31   ;;  %206 = vperm.xlu0 %5237, %v5563_v32  }
  0x42   :  { %5240 = vset.pattern.permute.xlu1 %v5335_v33  ;;  %5239 = vset.pattern.permute.xlu0 %v5335_v33 }
  0x43   :  { %255 = vperm.xlu1 %5240, %v5395_v4   ;;  %251 = vperm.xlu0 %5239, %v5383_v1  }
  0x47   :  { %259 = vperm.xlu1 %5240, %v5378_v0   ;;  %263 = vperm.xlu0 %5239, %v5390_v3  }
  0x4b   :  { %267 = vperm.xlu1 %5240, %v5407_v6   ;;  %271 = vperm.xlu0 %5239, %v5402_v5  }
  0x4f   :  { %275 = vperm.xlu1 %5240, %v5419_v8   ;;  %279 = vperm.xlu0 %5239, %v5414_v7  }
  0x53   :  { %283 = vperm.xlu1 %5240, %v5431_v10   ;;  %287 = vperm.xlu0 %5239, %v5426_v9  }
  0x57   :  { %291 = vperm.xlu1 %5240, %v5443_v12   ;;  %295 = vperm.xlu0 %5239, %v5438_v11  }
  0x5b   :  { %299 = vperm.xlu1 %5240, %v5455_v14   ;;  %303 = vperm.xlu0 %5239, %v5450_v13  }
  0x5f   :  { %307 = vperm.xlu1 %5240, %v5467_v16   ;;  %311 = vperm.xlu0 %5239, %v5462_v15  }
  0x63   :  { %315 = vperm.xlu1 %5240, %v5479_v18   ;;  %319 = vperm.xlu0 %5239, %v5474_v17  }
  0x67   :  { %323 = vperm.xlu1 %5240, %v5491_v20   ;;  %327 = vperm.xlu0 %5239, %v5486_v19  }
  0x6b   :  { %331 = vperm.xlu1 %5240, %v5503_v22   ;;  %335 = vperm.xlu0 %5239, %v5498_v21  }
  0x6f   :  { %339 = vperm.xlu1 %5240, %v5515_v24   ;;  %343 = vperm.xlu0 %5239, %v5510_v23  }
  0x73   :  { %347 = vperm.xlu1 %5240, %v5527_v26   ;;  %351 = vperm.xlu0 %5239, %v5522_v25  }
  0x77   :  { %355 = vperm.xlu1 %5240, %v5539_v28   ;;  %359 = vperm.xlu0 %5239, %v5534_v27   ;;  %v53_v27 = vld [vmem:[%s7233_s3] sm:$0xff] }
  0x7b   :  { %363 = vperm.xlu1 %5240, %v5551_v30   ;;  %367 = vperm.xlu0 %5239, %v5546_v29   ;;  %v380_v29 = vsub.s32 1, %v5651_v34 }
  0x7d   :  { %v67_v36 = vpop.permute.xlu1 %66  ;;  %v57_v37 = vpop.permute.xlu0 %56  ;;  %v5668_v63 = vrot.slane %v53_v27, %v380_v29 }
  0x7f   :  { %371 = vperm.xlu1 %5240, %v5563_v32   ;;  %375 = vperm.xlu0 %5239, %v5558_v31   ;;  %v216_v31 = vsub.s32 0, %v5651_v34 }
  0x81   :  { %v72_v38 = vpop.permute.xlu1 %71  ;;  %v62_v39 = vpop.permute.xlu0 %61  ;;  %v5666_v30 = vrot.slane %v53_v27, %v216_v31 }
  0x83   :  { %5241 = vset.pattern.permute.xlu1 %v5336_v40  ;;  %5242 = vset.pattern.permute.xlu0 %v5336_v40  ;;  %v218_v21 = vmul.f32 %v5666_v30, %v57_v37  ;;  %v219_v26 = vmul.f32 %v5666_v30, %v62_v39  ;;  %v220_v22 = vmul.f32 %v5666_v30, %v67_v36 }
  0x84   :  { %v221_v31 = vmul.f32 %v5666_v30, %v72_v38 }
  0x85   :  { %v82_v41 = vpop.permute.xlu1 %81  ;;  %v77_v42 = vpop.permute.xlu0 %76 }
  0x89   :  { %v5607_v43 = vpop.permute.xlu1 %91  ;;  %v5609_v44 = vpop.permute.xlu0 %86 }
  0x8a   :  { %v225_v38 = vmul.f32 %v5666_v30, %v5607_v43  ;;  %v452_v43 = vld [vmem:[%s7231_s1 + $0x30] sm:$0xff] }
  0x8d   :  { %v5611_v45 = vpop.permute.xlu1 %101  ;;  %v5613_v46 = vpop.permute.xlu0 %96 }
  0x91   :  { %v5615_v47 = vpop.permute.xlu1 %111  ;;  %v5617_v48 = vpop.permute.xlu0 %106 }
  0x95   :  { %v5619_v49 = vpop.permute.xlu1 %121  ;;  %v5621_v50 = vpop.permute.xlu0 %116 }
  0x99   :  { %v5623_v51 = vpop.permute.xlu1 %131  ;;  %v5625_v52 = vpop.permute.xlu0 %126 }
  0x9d   :  { %v5627_v53 = vpop.permute.xlu1 %141  ;;  %v5629_v54 = vpop.permute.xlu0 %136 }
  0xa1   :  { %v5631_v55 = vpop.permute.xlu1 %151  ;;  %v5633_v56 = vpop.permute.xlu0 %146 }
  0xa5   :  { %v5635_v57 = vpop.permute.xlu1 %161  ;;  %v5637_v58 = vpop.permute.xlu0 %156 }
  0xa9   :  { %v5639_v59 = vpop.permute.xlu1 %171  ;;  %v5641_v60 = vpop.permute.xlu0 %166 }
  0xad   :  { %v5643_v61 = vpop.permute.xlu1 %181  ;;  %v5645_v62 = vpop.permute.xlu0 %176 }
  0xb1   :  { %v5647_v2 = vpop.permute.xlu1 %191  ;;  %v5649_v33 = vpop.permute.xlu0 %186 }
  0xb5   :  { %v5653_v35 = vpop.permute.xlu1 %201  ;;  %v5655_v40 = vpop.permute.xlu0 %196 }
  0xb9   :  { %v5662_v32 = vpop.permute.xlu1 %211  ;;  %v5664_v25 = vpop.permute.xlu0 %206 }
  0xbe   :  { %v256_v23 = vpop.permute.xlu1 %255  ;;  %v252_v28 = vpop.permute.xlu0 %251 }
  0xbf   :  { %v383_v34 = vmul.f32 %v5668_v63, %v256_v23  ;;  %v382_v19 = vmul.f32 %v5668_v63, %v252_v28 }
  0xc1   :  { %v415_v24 = vadd.f32 %v383_v34, %v219_v26  ;;  %v414_v17 = vadd.f32 %v382_v19, %v218_v21  ;;  %v223_v19 = vmul.f32 %v5666_v30, %v82_v41  ;;  %v224_v34 = vmul.f32 %v5666_v30, %v5609_v44 }
  0xc2   :  { %v260_v15 = vpop.permute.xlu1 %259  ;;  %v264_v20 = vpop.permute.xlu0 %263  ;;  %v227_v44 = vmul.f32 %v5666_v30, %v5611_v45  ;;  %v454_v45 = vld [vmem:[%s7231_s1 + $0x40] sm:$0xff] }
  0xc3   :  { %v384_v27 = vmul.f32 %v5668_v63, %v260_v15  ;;  %v385_v29 = vmul.f32 %v5668_v63, %v264_v20  ;;  %1811 = vrot.lane.b32.xlu0 %v415_v24, %s5337_s13  ;;  %4922 = vmatprep.subr.mxu0 %v415_v24  ;;  %v447_v15 = vld [vmem:[%s7231_s1 + $0x8] sm:$0xff]  ;;  %v222_v20 = vmul.f32 %v5666_v30, %v77_v42  ;;  %v449_v42 = vld [vmem:[%s7231_s1 + $0x18] sm:$0xff] }
  0xc4   :  { %1809 = vrot.lane.b32.xlu1 %v414_v17, %s5337_s13  ;;  %4923 = vmatpush3.msra.mxu0 %v415_v24 }
  0xc5   :  { %v416_v23 = vadd.f32 %v384_v27, %v220_v22  ;;  %v417_v26 = vadd.f32 %v385_v29, %v221_v31  ;;  %4924 = vmatprep.subr.mxu0 %v414_v17  ;;  %v450_v22 = vld [vmem:[%s7231_s1 + $0x20] sm:$0xff] }
  0xc6   :  { %v268_v21 = vpop.permute.xlu1 %267  ;;  %4925 = vmatpush3.msra.mxu0 %v414_v17  ;;  %v272_v28 = vpop.permute.xlu0 %271 }
  0xc7   :  { %v386_v36 = vmul.f32 %v5668_v63, %v268_v21  ;;  %v387_v37 = vmul.f32 %v5668_v63, %v272_v28  ;;  %1900 = vrot.lane.b32.xlu0 %v417_v26, %s5337_s13  ;;  %4929 = vmatprep.subr.mxu1 %v417_v26  ;;  %v451_v21 = vld [vmem:[%s7231_s1 + $0x28] sm:$0xff]  ;;  %v226_v28 = vmul.f32 %v5666_v30, %v5613_v46 }
  0xc8   :  { %1898 = vrot.lane.b32.xlu1 %v416_v23, %s5337_s13  ;;  %4930 = vmatpush3.msra.mxu1 %v417_v26  ;;  %v229_v46 = vmul.f32 %v5666_v30, %v5615_v47  ;;  %v456_v47 = vld [vmem:[%s7231_s1 + $0x50] sm:$0xff] }
  0xc9   :  { %v418_v17 = vadd.f32 %v386_v36, %v222_v20  ;;  %v419_v24 = vadd.f32 %v387_v37, %v223_v19  ;;  %4931 = vmatprep.subr.mxu1 %v416_v23  ;;  %4927 = vmatmul.mubr.msk.f32.vlgmr.msra.gmra.mxu0 %vm478_vm0, %v447_v15 }
  0xca   :  { %v276_v39 = vpop.permute.xlu1 %275  ;;  %4932 = vmatpush3.msra.mxu1 %v416_v23  ;;  %v280_v41 = vpop.permute.xlu0 %279  ;;  %4940 = vmatprep.mubr.msk.f32.mxu0 %vm478_vm0, %v450_v22 }
  0xcb   :  { %v388_v31 = vmul.f32 %v5668_v63, %v276_v39  ;;  %v389_v27 = vmul.f32 %v5668_v63, %v280_v41  ;;  %1989 = vrot.lane.b32.xlu0 %v419_v24, %s5337_s13  ;;  %4936 = vmatprep.subr.mxu0 %v419_v24 }
  0xcc   :  { %1987 = vrot.lane.b32.xlu1 %v418_v17, %s5337_s13  ;;  %4937 = vmatpush3.msra.mxu0 %v419_v24  ;;  %v453_v24 = vld [vmem:[%s7231_s1 + $0x38] sm:$0xff] }
  0xcd   :  { %v420_v29 = vadd.f32 %v388_v31, %v224_v34  ;;  %v421_v23 = vadd.f32 %v389_v27, %v225_v38  ;;  %4938 = vmatprep.subr.mxu0 %v418_v17  ;;  %4934 = vmatmul.mubr.msk.f32.vlgmr.msra.gmra.mxu1 %vm478_vm0, %v449_v42  ;;  %v228_v38 = vmul.f32 %v5666_v30, %v5617_v48 }
  0xce   :  { %v284_v26 = vpop.permute.xlu1 %283  ;;  %4939 = vmatpush3.msra.mxu0 %v418_v17  ;;  %v288_v19 = vpop.permute.xlu0 %287  ;;  %4947 = vmatprep.mubr.msk.f32.mxu1 %vm478_vm0, %v452_v43  ;;  %v231_v48 = vmul.f32 %v5666_v30, %v5619_v49  ;;  %v455_v43 = vld [vmem:[%s7231_s1 + $0x48] sm:$0xff]  ;;  %v458_v49 = vld [vmem:[%s7231_s1 + $0x60] sm:$0xff] }
  0xcf   :  { %v390_v15 = vmul.f32 %v5668_v63, %v284_v26  ;;  %v391_v20 = vmul.f32 %v5668_v63, %v288_v19  ;;  %2078 = vrot.lane.b32.xlu0 %v421_v23, %s5337_s13  ;;  %4943 = vmatprep.subr.mxu1 %v421_v23 }
  0xd0   :  { %2076 = vrot.lane.b32.xlu1 %v420_v29, %s5337_s13  ;;  %4944 = vmatpush3.msra.mxu1 %v421_v23 }
  0xd1   :  { %v422_v36 = vadd.f32 %v390_v15, %v226_v28  ;;  %v423_v37 = vadd.f32 %v391_v20, %v227_v44  ;;  %4945 = vmatprep.subr.mxu1 %v420_v29  ;;  %4941 = vmatmul.mubr.msk.f32.vlgmr.msra.gmra.mxu0 %vm478_vm0, %v451_v21  ;;  %v457_v15 = vld [vmem:[%s7231_s1 + $0x58] sm:$0xff]  ;;  %v232_v20 = vmul.f32 %v5666_v30, %v5625_v52 }
  0xd2   :  { %v292_v22 = vpop.permute.xlu1 %291  ;;  %4946 = vmatpush3.msra.mxu1 %v420_v29  ;;  %v296_v17 = vpop.permute.xlu0 %295  ;;  %4954 = vmatprep.mubr.msk.f32.mxu0 %vm478_vm0, %v454_v45  ;;  %v230_v29 = vmul.f32 %v5666_v30, %v5621_v50  ;;  %v233_v50 = vmul.f32 %v5666_v30, %v5623_v51  ;;  %v460_v51 = vld [vmem:[%s7231_s1 + $0x70] sm:$0xff]  ;;  %v235_v52 = vmul.f32 %v5666_v30, %v5627_v53  ;;  %v462_v53 = vld [vmem:[%s7231_s1 + $0x80] sm:$0xff] }
  0xd3   :  { %v392_v39 = vmul.f32 %v5668_v63, %v292_v22  ;;  %v393_v41 = vmul.f32 %v5668_v63, %v296_v17  ;;  %2167 = vrot.lane.b32.xlu0 %v423_v37, %s5337_s13  ;;  %4950 = vmatprep.subr.mxu0 %v423_v37 }
  0xd4   :  { %2165 = vrot.lane.b32.xlu1 %v422_v36, %s5337_s13  ;;  %4951 = vmatpush3.msra.mxu0 %v423_v37 }
  0xd5   :  { %v424_v42 = vadd.f32 %v392_v39, %v228_v38  ;;  %v425_v34 = vadd.f32 %v393_v41, %v229_v46  ;;  %4952 = vmatprep.subr.mxu0 %v422_v36  ;;  %4948 = vmatmul.mubr.msk.f32.vlgmr.msra.gmra.mxu1 %vm478_vm0, %v453_v24  ;;  %v459_v24 = vld [vmem:[%s7231_s1 + $0x68] sm:$0xff]  ;;  %v234_v38 = vmul.f32 %v5666_v30, %v5629_v54 }
  0xd6   :  { %v300_v31 = vpop.permute.xlu1 %299  ;;  %4953 = vmatpush3.msra.mxu0 %v422_v36  ;;  %v304_v27 = vpop.permute.xlu0 %303  ;;  %4961 = vmatprep.mubr.msk.f32.mxu1 %vm478_vm0, %v456_v47  ;;  %v237_v54 = vmul.f32 %v5666_v30, %v5631_v55  ;;  %v464_v55 = vld [vmem:[%s7231_s1 + $0x90] sm:$0xff] }
  0xd7   :  { %v394_v23 = vmul.f32 %v5668_v63, %v300_v31  ;;  %v395_v44 = vmul.f32 %v5668_v63, %v304_v27  ;;  %2256 = vrot.lane.b32.xlu0 %v425_v34, %s5337_s13  ;;  %4957 = vmatprep.subr.mxu1 %v425_v34  ;;  %v461_v31 = vld [vmem:[%s7231_s1 + $0x78] sm:$0xff]  ;;  %v236_v27 = vmul.f32 %v5666_v30, %v5633_v56 }
  0xd8   :  { %2254 = vrot.lane.b32.xlu1 %v424_v42, %s5337_s13  ;;  %4958 = vmatpush3.msra.mxu1 %v425_v34  ;;  %v239_v56 = vmul.f32 %v5666_v30, %v5635_v57  ;;  %v466_v57 = vld [vmem:[%s7231_s1 + $0xa0] sm:$0xff] }
  0xd9   :  { %v426_v26 = vadd.f32 %v394_v23, %v230_v29  ;;  %v427_v19 = vadd.f32 %v395_v44, %v231_v48  ;;  %4959 = vmatprep.subr.mxu1 %v424_v42  ;;  %4955 = vmatmul.mubr.msk.f32.vlgmr.msra.gmra.mxu0 %vm478_vm0, %v455_v43 }
  0xda   :  { %v308_v21 = vpop.permute.xlu1 %307  ;;  %4960 = vmatpush3.msra.mxu1 %v424_v42  ;;  %v312_v28 = vpop.permute.xlu0 %311  ;;  %4968 = vmatprep.mubr.msk.f32.mxu0 %vm478_vm0, %v458_v49 }
  0xdb   :  { %v396_v45 = vmul.f32 %v5668_v63, %v308_v21  ;;  %v397_v36 = vmul.f32 %v5668_v63, %v312_v28  ;;  %2345 = vrot.lane.b32.xlu0 %v427_v19, %s5337_s13  ;;  %4964 = vmatprep.subr.mxu0 %v427_v19 }
  0xdc   :  { %2343 = vrot.lane.b32.xlu1 %v426_v26, %s5337_s13  ;;  %4965 = vmatpush3.msra.mxu0 %v427_v19  ;;  %v463_v19 = vld [vmem:[%s7231_s1 + $0x88] sm:$0xff] }
  0xdd   :  { %v428_v37 = vadd.f32 %v396_v45, %v232_v20  ;;  %v429_v46 = vadd.f32 %v397_v36, %v233_v50  ;;  %4966 = vmatprep.subr.mxu0 %v426_v26  ;;  %4962 = vmatmul.mubr.msk.f32.vlgmr.msra.gmra.mxu1 %vm478_vm0, %v457_v15  ;;  %v238_v50 = vmul.f32 %v5666_v30, %v5637_v58 }
  0xde   :  { %v316_v22 = vpop.permute.xlu1 %315  ;;  %4967 = vmatpush3.msra.mxu0 %v426_v26  ;;  %v320_v17 = vpop.permute.xlu0 %319  ;;  %4975 = vmatprep.mubr.msk.f32.mxu1 %vm478_vm0, %v460_v51  ;;  %v241_v58 = vmul.f32 %v5666_v30, %v5639_v59  ;;  %v465_v51 = vld [vmem:[%s7231_s1 + $0x98] sm:$0xff]  ;;  %v468_v59 = vld [vmem:[%s7231_s1 + $0xb0] sm:$0xff] }
  0xdf   :  { %v398_v39 = vmul.f32 %v5668_v63, %v316_v22  ;;  %v399_v41 = vmul.f32 %v5668_v63, %v320_v17  ;;  %2434 = vrot.lane.b32.xlu0 %v429_v46, %s5337_s13  ;;  %4971 = vmatprep.subr.mxu1 %v429_v46 }
  0xe0   :  { %2432 = vrot.lane.b32.xlu1 %v428_v37, %s5337_s13  ;;  %4972 = vmatpush3.msra.mxu1 %v429_v46 }
  0xe1   :  { %v430_v47 = vadd.f32 %v398_v39, %v234_v38  ;;  %v431_v42 = vadd.f32 %v399_v41, %v235_v52  ;;  %4973 = vmatprep.subr.mxu1 %v428_v37  ;;  %4969 = vmatmul.mubr.msk.f32.vlgmr.msra.gmra.mxu0 %vm478_vm0, %v459_v24  ;;  %v467_v39 = vld [vmem:[%s7231_s1 + $0xa8] sm:$0xff]  ;;  %v242_v41 = vmul.f32 %v5666_v30, %v5645_v62 }
  0xe2   :  { %v324_v34 = vpop.permute.xlu1 %323  ;;  %4974 = vmatpush3.msra.mxu1 %v428_v37  ;;  %v328_v48 = vpop.permute.xlu0 %327  ;;  %4982 = vmatprep.mubr.msk.f32.mxu0 %vm478_vm0, %v462_v53  ;;  %v240_v37 = vmul.f32 %v5666_v30, %v5641_v60  ;;  %v243_v60 = vmul.f32 %v5666_v30, %v5643_v61  ;;  %v470_v61 = vld [vmem:[%s7231_s1 + $0xc0] sm:$0xff]  ;;  %v245_v62 = vmul.f32 %v5666_v30, %v5647_v2  ;;  %v472_v2 = vld [vmem:[%s7231_s1 + $0xd0] sm:$0xff] }
  0xe3   :  { %v400_v43 = vmul.f32 %v5668_v63, %v324_v34  ;;  %v401_v29 = vmul.f32 %v5668_v63, %v328_v48  ;;  %2523 = vrot.lane.b32.xlu0 %v431_v42, %s5337_s13  ;;  %4978 = vmatprep.subr.mxu0 %v431_v42 }
  0xe4   :  { %2521 = vrot.lane.b32.xlu1 %v430_v47, %s5337_s13  ;;  %4979 = vmatpush3.msra.mxu0 %v431_v42 }
  0xe5   :  { %v432_v23 = vadd.f32 %v400_v43, %v236_v27  ;;  %v433_v44 = vadd.f32 %v401_v29, %v237_v54  ;;  %4980 = vmatprep.subr.mxu0 %v430_v47  ;;  %4976 = vmatmul.mubr.msk.f32.vlgmr.msra.gmra.mxu1 %vm478_vm0, %v461_v31  ;;  %v469_v31 = vld [vmem:[%s7231_s1 + $0xb8] sm:$0xff]  ;;  %v244_v27 = vmul.f32 %v5666_v30, %v5649_v33 }
  0xe6   :  { %v332_v49 = vpop.permute.xlu1 %331  ;;  %4981 = vmatpush3.msra.mxu0 %v430_v47  ;;  %v336_v26 = vpop.permute.xlu0 %335  ;;  %4989 = vmatprep.mubr.msk.f32.mxu1 %vm478_vm0, %v464_v55  ;;  %v247_v33 = vmul.f32 %v5666_v30, %v5653_v35  ;;  %v474_v35 = vld [vmem:[%s7231_s1 + $0xe0] sm:$0xff] }
  0xe7   :  { %v402_v21 = vmul.f32 %v5668_v63, %v332_v49  ;;  %v403_v28 = vmul.f32 %v5668_v63, %v336_v26  ;;  %2612 = vrot.lane.b32.xlu0 %v433_v44, %s5337_s13  ;;  %4985 = vmatprep.subr.mxu1 %v433_v44  ;;  %v471_v49 = vld [vmem:[%s7231_s1 + $0xc8] sm:$0xff]  ;;  %v246_v26 = vmul.f32 %v5666_v30, %v5655_v40 }
  0xe8   :  { %2610 = vrot.lane.b32.xlu1 %v432_v23, %s5337_s13  ;;  %4986 = vmatpush3.msra.mxu1 %v433_v44  ;;  %v249_v40 = vmul.f32 %v5666_v30, %v5662_v32  ;;  %v476_v32 = vld [vmem:[%s7231_s1 + $0xf0] sm:$0xff] }
  0xe9   :  { %v434_v15 = vadd.f32 %v402_v21, %v238_v50  ;;  %v435_v20 = vadd.f32 %v403_v28, %v239_v56  ;;  %4987 = vmatprep.subr.mxu1 %v432_v23  ;;  %4983 = vmatmul.mubr.msk.f32.vlgmr.msra.gmra.mxu0 %vm478_vm0, %v463_v19 }
  0xea   :  { %v340_v45 = vpop.permute.xlu1 %339  ;;  %4988 = vmatpush3.msra.mxu1 %v432_v23  ;;  %v344_v36 = vpop.permute.xlu0 %343  ;;  %4996 = vmatprep.mubr.msk.f32.mxu0 %vm478_vm0, %v466_v57 }
  0xeb   :  { %v404_v46 = vmul.f32 %v5668_v63, %v340_v45  ;;  %v405_v52 = vmul.f32 %v5668_v63, %v344_v36  ;;  %2701 = vrot.lane.b32.xlu0 %v435_v20, %s5337_s13  ;;  %4992 = vmatprep.subr.mxu0 %v435_v20 }
  0xec   :  { %2699 = vrot.lane.b32.xlu1 %v434_v15, %s5337_s13  ;;  %4993 = vmatpush3.msra.mxu0 %v435_v20  ;;  %v473_v20 = vld [vmem:[%s7231_s1 + $0xd8] sm:$0xff] }
  0xed   :  { %v436_v22 = vadd.f32 %v404_v46, %v240_v37  ;;  %v437_v17 = vadd.f32 %v405_v52, %v241_v58  ;;  %4994 = vmatprep.subr.mxu0 %v434_v15  ;;  %4990 = vmatmul.mubr.msk.f32.vlgmr.msra.gmra.mxu1 %vm478_vm0, %v465_v51  ;;  %v248_v58 = vmul.f32 %v5666_v30, %v5664_v25  ;;  %v475_v25 = vld [vmem:[%s7231_s1 + $0xe8] sm:$0xff]  ;;  %v1775_v30 = vld [vmem:[%s7232_s2] sm:$0xff]  ;;  %v1777_v46 = vld [vmem:[%s7232_s2 + $0x10] sm:$0xff] }
  0xee   :  { %v348_v24 = vpop.permute.xlu1 %347  ;;  %4995 = vmatpush3.msra.mxu0 %v434_v15  ;;  %v352_v38 = vpop.permute.xlu0 %351  ;;  %5003 = vmatprep.mubr.msk.f32.mxu1 %vm478_vm0, %v468_v59  ;;  %v1776_v52 = vld [vmem:[%s7232_s2 + $0x8] sm:$0xff]  ;;  %v7291_v59 = vld [vmem:[#allocation13_spill] sm:$0xff] }
  0xef   :  { %v406_v53 = vmul.f32 %v5668_v63, %v348_v24  ;;  %v407_v47 = vmul.f32 %v5668_v63, %v352_v38  ;;  %2790 = vrot.lane.b32.xlu0 %v437_v17, %s5337_s13  ;;  %4999 = vmatprep.subr.mxu1 %v437_v17  ;;  %v7292_v24 = vld [vmem:[#allocation20_spill] sm:$0xff] }
  0xf0   :  { %2788 = vrot.lane.b32.xlu1 %v436_v22, %s5337_s13  ;;  %5000 = vmatpush3.msra.mxu1 %v437_v17  ;;  %v1778_v38 = vld [vmem:[%s7232_s2 + $0x18] sm:$0xff] }
  0xf1   :  { %v438_v42 = vadd.f32 %v406_v53, %v242_v41  ;;  %v439_v54 = vadd.f32 %v407_v47, %v243_v60  ;;  %5001 = vmatprep.subr.mxu1 %v436_v22  ;;  %4997 = vmatmul.mubr.msk.f32.vlgmr.msra.gmra.mxu0 %vm478_vm0, %v467_v39  ;;  %v1779_v60 = vld [vmem:[%s7232_s2 + $0x20] sm:$0xff]  ;;  %v7293_v39 = vld [vmem:[#allocation15_spill] sm:$0xff] }
  0xf2   :  { %v356_v34 = vpop.permute.xlu1 %355  ;;  %5002 = vmatpush3.msra.mxu1 %v436_v22  ;;  %v360_v48 = vpop.permute.xlu0 %359  ;;  %5010 = vmatprep.mubr.msk.f32.mxu0 %vm478_vm0, %v470_v61  ;;  %v1781_v47 = vld [vmem:[%s7232_s2 + $0x30] sm:$0xff]  ;;  %v7258_v61 = vmov 3  }
  0xf3   :  { %v408_v43 = vmul.f32 %v5668_v63, %v356_v34  ;;  %v409_v29 = vmul.f32 %v5668_v63, %v360_v48  ;;  %2879 = vrot.lane.b32.xlu0 %v439_v54, %s5337_s13  ;;  %5006 = vmatprep.subr.mxu0 %v439_v54  ;;  %v1783_v48 = vld [vmem:[%s7232_s2 + $0x40] sm:$0xff] }
  0xf4   :  { %2877 = vrot.lane.b32.xlu1 %v438_v42, %s5337_s13  ;;  %5007 = vmatpush3.msra.mxu0 %v439_v54  ;;  %v1780_v54 = vld [vmem:[%s7232_s2 + $0x28] sm:$0xff] }
  0xf5   :  { %v440_v55 = vadd.f32 %v408_v43, %v244_v27  ;;  %v441_v23 = vadd.f32 %v409_v29, %v245_v62  ;;  %5008 = vmatprep.subr.mxu0 %v438_v42  ;;  %5004 = vmatmul.mubr.msk.f32.vlgmr.msra.gmra.mxu1 %vm478_vm0, %v469_v31  ;;  %v7295_v31 = vld [vmem:[#allocation19_spill] sm:$0xff]  ;;  %v5991_v29 = vld [vmem:[%s7230_s0 + $0x8] sm:$0xff] }
  0xf6   :  { %v364_v44 = vpop.permute.xlu1 %363  ;;  %5009 = vmatpush3.msra.mxu0 %v438_v42  ;;  %v368_v56 = vpop.permute.xlu0 %367  ;;  %5017 = vmatprep.mubr.msk.f32.mxu1 %vm478_vm0, %v472_v2  ;;  %v7294_v42 = vld [vmem:[#allocation17_spill] sm:$0xff] }
  0xf7   :  { %v410_v19 = vmul.f32 %v5668_v63, %v364_v44  ;;  %v411_v50 = vmul.f32 %v5668_v63, %v368_v56  ;;  %2968 = vrot.lane.b32.xlu0 %v441_v23, %s5337_s13  ;;  %5013 = vmatprep.subr.mxu1 %v441_v23  ;;  %v6010_v44 = vld [vmem:[%s7230_s0 + $0x10] sm:$0xff] }
  0xf8   :  { %2966 = vrot.lane.b32.xlu1 %v440_v55, %s5337_s13  ;;  %5014 = vmatpush3.msra.mxu1 %v441_v23  ;;  %v6001_v23 = vld [vmem:[%s7230_s0 + $0x38] sm:$0xff] }
  0xf9   :  { %v442_v21 = vadd.f32 %v410_v19, %v246_v26  ;;  %v443_v28 = vadd.f32 %v411_v50, %v247_v33  ;;  %5015 = vmatprep.subr.mxu1 %v440_v55  ;;  %5011 = vmatmul.mubr.msk.f32.vlgmr.msra.gmra.mxu0 %vm478_vm0, %v471_v49  ;;  %v1786_v33 = vld [vmem:[%s7232_s2 + $0x58] sm:$0xff]  ;;  %v1787_v26 = vld [vmem:[%s7232_s2 + $0x60] sm:$0xff]  ;;  %v6021_v19 = vld [vmem:[%s7230_s0 + $0x48] sm:$0xff] }
  0xfa   :  { %v372_v57 = vpop.permute.xlu1 %371  ;;  %5016 = vmatpush3.msra.mxu1 %v440_v55  ;;  %v376_v15 = vpop.permute.xlu0 %375  ;;  %5024 = vmatprep.mubr.msk.f32.mxu0 %vm478_vm0, %v474_v35  ;;  %v1788_v50 = vld [vmem:[%s7232_s2 + $0x68] sm:$0xff]  ;;  %v6030_v35 = vld [vmem:[%s7230_s0 + $0x20] sm:$0xff] }
  0xfb   :  { %v412_v45 = vmul.f32 %v5668_v63, %v372_v57  ;;  %v413_v36 = vmul.f32 %v5668_v63, %v376_v15  ;;  %3057 = vrot.lane.b32.xlu0 %v443_v28, %s5337_s13  ;;  %5020 = vmatprep.subr.mxu0 %v443_v28  ;;  %v477_v63 = vld [vmem:[%s7231_s1 + $0xf8] sm:$0xff] }
  0xfc   :  { %3055 = vrot.lane.b32.xlu1 %v442_v21, %s5337_s13  ;;  %5021 = vmatpush3.msra.mxu0 %v443_v28  ;;  %v6041_v57 = vld [vmem:[%s7230_s0 + $0x58] sm:$0xff] }
  0xfd   :  { %v444_v51 = vadd.f32 %v412_v45, %v248_v58  ;;  %v445_v37 = vadd.f32 %v413_v36, %v249_v40  ;;  %5022 = vmatprep.subr.mxu0 %v442_v21  ;;  %5018 = vmatmul.mubr.msk.f32.vlgmr.msra.gmra.mxu1 %vm478_vm0, %v473_v20  ;;  %v1789_v40 = vld [vmem:[%s7232_s2 + $0x70] sm:$0xff]  ;;  %v1790_v15 = vld [vmem:[%s7232_s2 + $0x78] sm:$0xff]  ;;  %v1791_v36 = vld [vmem:[%s7232_s2 + $0x80] sm:$0xff] }
  0xfe   :  { %5023 = vmatpush3.msra.mxu0 %v442_v21  ;;  %5031 = vmatprep.mubr.msk.f32.mxu1 %vm478_vm0, %v476_v32  ;;  %v6050_v20 = vld [vmem:[%s7230_s0 + $0x30] sm:$0xff]  ;;  %v6061_v32 = vld [vmem:[%s7230_s0 + $0x68] sm:$0xff] }
  0xff   :  { %3146 = vrot.lane.b32.xlu0 %v445_v37, %s5337_s13  ;;  %5027 = vmatprep.subr.mxu1 %v445_v37 }
 0x100   :  { %3144 = vrot.lane.b32.xlu1 %v444_v51, %s5337_s13  ;;  %5028 = vmatpush3.msra.mxu1 %v445_v37  ;;  %v6070_v37 = vld [vmem:[%s7230_s0 + $0x40] sm:$0xff] }
 0x101   :  { %5029 = vmatprep.subr.mxu1 %v444_v51  ;;  %5025 = vmatmul.mubr.msk.f32.vlgmr.msra.gmra.mxu0 %vm478_vm0, %v475_v25 }
 0x102   :  { %5030 = vmatpush3.msra.mxu1 %v444_v51  ;;  %5038 = vmatprep.mubr.msk.f32.mxu0 %vm478_vm0, %v1775_v30  ;;  %v1792_v51 = vld [vmem:[%s7232_s2 + $0x88] sm:$0xff] }
 0x103   :  { %3397 = vperm.xlu0 %5242, %v5395_v4   ;;  %5032 = vmatmul.mubr.msk.f32.vlgmr.msra.gmra.mxu1 %vm478_vm0, %v477_v63  ;;  %v7281_v4 = vld [vmem:[#allocation5_spill] sm:$0xff]  ;;  %v1793_v63 = vld [vmem:[%s7232_s2 + $0x90] sm:$0xff] }
 0x104   :  { %3393 = vperm.xlu1 %5241, %v5383_v1   ;;  %5045 = vmatprep.mubr.msk.f32.mxu1 %vm478_vm0, %v1777_v46  ;;  %v6081_v46 = vld [vmem:[%s7230_s0 + $0x78] sm:$0xff] }
 0x107   :  { %3409 = vperm.xlu0 %5242, %v5407_v6   ;;  %v7282_v6 = vld [vmem:[#allocation10_spill] sm:$0xff] }
 0x108   :  { %3401 = vperm.xlu1 %5241, %v5378_v0   ;;  %v7280_v0 = vld [vmem:[#allocation8_spill] sm:$0xff] }
 0x10b   :  { %3417 = vperm.xlu0 %5242, %v5419_v8   ;;  %v7283_v8 = vld [vmem:[#allocation6_spill] sm:$0xff] }
 0x10c   :  { %3405 = vperm.xlu1 %5241, %v5390_v3  }
 0x10f   :  { %3425 = vperm.xlu0 %5242, %v5431_v10   ;;  %v7285_v10 = vld [vmem:[#allocation7_spill] sm:$0xff] }
 0x110   :  { %3413 = vperm.xlu1 %5241, %v5402_v5  }
 0x113   :  { %3433 = vperm.xlu0 %5242, %v5443_v12   ;;  %v7287_v12 = vld [vmem:[#allocation9_spill] sm:$0xff] }
 0x114   :  { %3421 = vperm.xlu1 %5241, %v5414_v7   ;;  %v7284_v7 = vld [vmem:[#allocation12_spill] sm:$0xff] }
 0x117   :  { %3441 = vperm.xlu0 %5242, %v5455_v14   ;;  %v7289_v14 = vld [vmem:[#allocation11_spill] sm:$0xff] }
 0x118   :  { %3429 = vperm.xlu1 %5241, %v5426_v9   ;;  %v7286_v9 = vld [vmem:[#allocation14_spill] sm:$0xff] }
 0x11b   :  { %3449 = vperm.xlu0 %5242, %v5467_v16  }
 0x11c   :  { %3437 = vperm.xlu1 %5241, %v5438_v11   ;;  %v7288_v11 = vld [vmem:[#allocation16_spill] sm:$0xff] }
 0x11f   :  { %3457 = vperm.xlu0 %5242, %v5479_v18   ;;  %v7290_v18 = vld [vmem:[#allocation18_spill] sm:$0xff] }
 0x120   :  { %3445 = vperm.xlu1 %5241, %v5450_v13  }
 0x123   :  { %3465 = vperm.xlu0 %5242, %v7280_v0   ;;  %v1794_v0 = vld [vmem:[%s7232_s2 + $0x98] sm:$0xff] }
 0x124   :  { %3453 = vperm.xlu1 %5241, %v7281_v4   ;;  %v6090_v4 = vld [vmem:[%s7230_s0 + $0x50] sm:$0xff] }
 0x127   :  { %3473 = vperm.xlu0 %5242, %v7282_v6  }
 0x128   :  { %3461 = vperm.xlu1 %5241, %v7283_v8  }
 0x12b   :  { %3481 = vperm.xlu0 %5242, %v7284_v7   ;;  %v1795_v7 = vld [vmem:[%s7232_s2 + $0xa0] sm:$0xff] }
 0x12c   :  { %3469 = vperm.xlu1 %5241, %v7285_v10   ;;  %v6101_v10 = vld [vmem:[%s7230_s0 + $0x88] sm:$0xff] }
 0x12f   :  { %3489 = vperm.xlu0 %5242, %v7286_v9   ;;  %v1796_v9 = vld [vmem:[%s7232_s2 + $0xa8] sm:$0xff] }
 0x130   :  { %3477 = vperm.xlu1 %5241, %v7287_v12   ;;  %v6110_v12 = vld [vmem:[%s7230_s0 + $0x60] sm:$0xff] }
 0x133   :  { %3497 = vperm.xlu0 %5242, %v7288_v11  }
 0x134   :  { %3485 = vperm.xlu1 %5241, %v7289_v14  }
 0x135   :  { %v1812_v13 = vpop.permute.xlu0 %1811 }
 0x136   :  { %v1810_v16 = vpop.permute.xlu1 %1809  ;;  %5034 = vmatprep.subr.mxu0 %v1812_v13 }
 0x137   :  { %3505 = vperm.xlu0 %5242, %v7290_v18   ;;  %5035 = vmatpush3.msra.mxu0 %v1812_v13  ;;  %v1797_v13 = vld [vmem:[%s7232_s2 + $0xb0] sm:$0xff]  ;;  %v1798_v18 = vld [vmem:[%s7232_s2 + $0xb8] sm:$0xff] }
 0x138   :  { %3493 = vperm.xlu1 %5241, %v7291_v59   ;;  %5036 = vmatprep.subr.mxu0 %v1810_v16 }
 0x139   :  { %5037 = vmatpush3.msra.mxu0 %v1810_v16  ;;  %v1901_v22 = vpop.permute.xlu0 %1900  ;;  %v6121_v16 = vld [vmem:[%s7230_s0 + $0x98] sm:$0xff] }
 0x13a   :  { %v1899_v17 = vpop.permute.xlu1 %1898  ;;  %5039 = vmatmul.mubr.msk.f32.vlgmr.msra.gmra.mxu0 %vm478_vm0, %v1776_v52  ;;  %5041 = vmatprep.subr.mxu1 %v1901_v22  ;;  %v6130_v52 = vld [vmem:[%s7230_s0 + $0x70] sm:$0xff] }
 0x13b   :  { %3513 = vperm.xlu0 %5242, %v7292_v24   ;;  %5042 = vmatpush3.msra.mxu1 %v1901_v22  ;;  %v1800_v24 = vld [vmem:[%s7232_s2 + $0xc8] sm:$0xff] }
 0x13c   :  { %3501 = vperm.xlu1 %5241, %v7293_v39   ;;  %5043 = vmatprep.subr.mxu1 %v1899_v17 }
 0x13d   :  { %5044 = vmatpush3.msra.mxu1 %v1899_v17  ;;  %v1990_v41 = vpop.permute.xlu0 %1989  ;;  %5052 = vmatprep.mubr.msk.f32.mxu0 %vm478_vm0, %v1779_v60  ;;  %v1799_v17 = vld [vmem:[%s7232_s2 + $0xc0] sm:$0xff] }
 0x13e   :  { %v1988_v53 = vpop.permute.xlu1 %1987  ;;  %5046 = vmatmul.mubr.msk.f32.vlgmr.msra.gmra.mxu1 %vm478_vm0, %v1778_v38  ;;  %5048 = vmatprep.subr.mxu0 %v1990_v41  ;;  %v6141_v60 = vld [vmem:[%s7230_s0 + $0xa0] sm:$0xff] }
 0x13f   :  { %5243 = vset.pattern.permute.xlu0 %v7258_v61  ;;  %5049 = vmatpush3.msra.mxu0 %v1990_v41  ;;  %v5294_v38 = vld [vmem:[%s7230_s0 + $0x80] sm:$0xff] }
 0x140   :  { %3509 = vperm.xlu1 %5241, %v7294_v42   ;;  %3557 = vperm.xlu0 %5243, %v5383_v1   ;;  %v1782_v1 = vld [vmem:[%s7232_s2 + $0x38] sm:$0xff] }
 0x141   :  { %5050 = vmatprep.subr.mxu0 %v1988_v53  ;;  %v2079_v62 = vpop.permute.xlu0 %2078  ;;  %5059 = vmatprep.mubr.msk.f32.mxu1 %vm478_vm0, %v1781_v47  ;;  %v6158_v47 = vld [vmem:[%s7230_s0 + $0xa8] sm:$0xff]  ;;  %v1802_v42 = vld [vmem:[%s7232_s2 + $0xd8] sm:$0xff] }
 0x142   :  { %v2077_v34 = vpop.permute.xlu1 %2076  ;;  %5051 = vmatpush3.msra.mxu0 %v1988_v53  ;;  %5055 = vmatprep.subr.mxu1 %v2079_v62  ;;  %v1801_v53 = vld [vmem:[%s7232_s2 + $0xd0] sm:$0xff] }
 0x143   :  { %5053 = vmatmul.mubr.msk.f32.vlgmr.msra.gmra.mxu0 %vm478_vm0, %v1780_v54  ;;  %5056 = vmatpush3.msra.mxu1 %v2079_v62  ;;  %v6167_v54 = vld [vmem:[%s7230_s0 + $0x90] sm:$0xff] }
 0x144   :  { %3517 = vperm.xlu1 %5241, %v7295_v31   ;;  %3569 = vperm.xlu0 %5243, %v5390_v3   ;;  %v1784_v3 = vld [vmem:[%s7232_s2 + $0x48] sm:$0xff]  ;;  %v1803_v31 = vld [vmem:[%s7232_s2 + $0xe0] sm:$0xff] }
 0x145   :  { %5057 = vmatprep.subr.mxu1 %v2077_v34  ;;  %v2168_v27 = vpop.permute.xlu0 %2167  ;;  %5066 = vmatprep.mubr.msk.f32.mxu0 %vm478_vm0, %v1783_v48  ;;  %v7254_v48 = vmov 4  }
 0x146   :  { %v2166_v43 = vpop.permute.xlu1 %2165  ;;  %5058 = vmatpush3.msra.mxu1 %v2077_v34  ;;  %5062 = vmatprep.subr.mxu0 %v2168_v27 }
 0x147   :  { %5060 = vmatmul.mubr.msk.f32.vlgmr.msra.gmra.mxu1 %vm478_vm0, %v1782_v1  ;;  %5063 = vmatpush3.msra.mxu0 %v2168_v27  ;;  %v1804_v27 = vld [vmem:[%s7232_s2 + $0xe8] sm:$0xff] }
 0x148   :  { %5244 = vset.pattern.permute.xlu1 %v7258_v61  ;;  %3577 = vperm.xlu0 %5243, %v5402_v5   ;;  %v1785_v5 = vld [vmem:[%s7232_s2 + $0x50] sm:$0xff] }
 0x149   :  { %3561 = vperm.xlu1 %5244, %v5991_v29   ;;  %5064 = vmatprep.subr.mxu0 %v2166_v43  ;;  %v2257_v2 = vpop.permute.xlu0 %2256 }
 0x14a   :  { %v2255_v55 = vpop.permute.xlu1 %2254  ;;  %5065 = vmatpush3.msra.mxu0 %v2166_v43  ;;  %5069 = vmatprep.subr.mxu1 %v2257_v2  ;;  %v6183_v43 = vld [vmem:[%s7230_s0] sm:$0xff] }
 0x14b   :  { %5067 = vmatmul.mubr.msk.f32.vlgmr.msra.gmra.mxu0 %vm478_vm0, %v1784_v3  ;;  %5070 = vmatpush3.msra.mxu1 %v2257_v2  ;;  %v1805_v2 = vld [vmem:[%s7232_s2 + $0xf0] sm:$0xff] }
 0x14c   :  { %3585 = vperm.xlu0 %5243, %v6001_v23   ;;  %5071 = vmatprep.subr.mxu1 %v2255_v55 }
 0x14d   :  { %3565 = vperm.xlu1 %5244, %v6010_v44   ;;  %5072 = vmatpush3.msra.mxu1 %v2255_v55  ;;  %v2346_v56 = vpop.permute.xlu0 %2345  ;;  %v1806_v55 = vld [vmem:[%s7232_s2 + $0xf8] sm:$0xff] }
 0x14e   :  { %v2344_v49 = vpop.permute.xlu1 %2343  ;;  %5073 = vmatprep.mubr.msk.f32.mxu1 %vm478_vm0, %v1785_v5  ;;  %5076 = vmatprep.subr.mxu0 %v2346_v56  ;;  %v6201_v5 = vld [vmem:[%s7230_s0 + $0x28] sm:$0xff] }
 0x14f   :  { %5074 = vmatmul.mubr.msk.f32.vlgmr.msra.gmra.mxu1 %vm478_vm0, %v1786_v33  ;;  %5077 = vmatpush3.msra.mxu0 %v2346_v56  ;;  %v7256_v33 = vmov 5  }
 0x150   :  { %3593 = vperm.xlu0 %5243, %v6021_v19   ;;  %5078 = vmatprep.subr.mxu0 %v2344_v49 }
 0x151   :  { %3573 = vperm.xlu1 %5244, %v6030_v35   ;;  %5079 = vmatpush3.msra.mxu0 %v2344_v49  ;;  %v2435_v21 = vpop.permute.xlu0 %2434 }
 0x152   :  { %v2433_v28 = vpop.permute.xlu1 %2432  ;;  %5080 = vmatprep.mubr.msk.f32.mxu0 %vm478_vm0, %v1787_v26  ;;  %5083 = vmatprep.subr.mxu1 %v2435_v21  ;;  %v6214_v26 = vld [vmem:[%s7230_s0 + $0xb8] sm:$0xff] }
 0x153   :  { %5081 = vmatmul.mubr.msk.f32.vlgmr.msra.gmra.mxu0 %vm478_vm0, %v1788_v50  ;;  %5084 = vmatpush3.msra.mxu1 %v2435_v21 }
 0x154   :  { %3601 = vperm.xlu0 %5243, %v6041_v57   ;;  %5085 = vmatprep.subr.mxu1 %v2433_v28 }
 0x155   :  { %3581 = vperm.xlu1 %5244, %v6050_v20   ;;  %5086 = vmatpush3.msra.mxu1 %v2433_v28  ;;  %v2524_v58 = vpop.permute.xlu0 %2523 }
 0x156   :  { %v2522_v45 = vpop.permute.xlu1 %2521  ;;  %5087 = vmatprep.mubr.msk.f32.mxu1 %vm478_vm0, %v1789_v40  ;;  %5090 = vmatprep.subr.mxu0 %v2524_v58 }
 0x157   :  { %5088 = vmatmul.mubr.msk.f32.vlgmr.msra.gmra.mxu1 %vm478_vm0, %v1790_v15  ;;  %5091 = vmatpush3.msra.mxu0 %v2524_v58  ;;  %v6232_v15 = vld [vmem:[%s7230_s0 + $0xc8] sm:$0xff] }
 0x158   :  { %3609 = vperm.xlu0 %5243, %v6061_v32   ;;  %5092 = vmatprep.subr.mxu0 %v2522_v45 }
 0x159   :  { %3589 = vperm.xlu1 %5244, %v6070_v37   ;;  %5093 = vmatpush3.msra.mxu0 %v2522_v45  ;;  %v2613_v25 = vpop.permute.xlu0 %2612  ;;  %v5301_v45 = vld [vmem:[%s7230_s0 + $0x18] sm:$0xff] }
 0x15a   :  { %v2611_v30 = vpop.permute.xlu1 %2610  ;;  %5094 = vmatprep.mubr.msk.f32.mxu0 %vm478_vm0, %v1791_v36  ;;  %5097 = vmatprep.subr.mxu1 %v2613_v25 }
 0x15b   :  { %5095 = vmatmul.mubr.msk.f32.vlgmr.msra.gmra.mxu0 %vm478_vm0, %v1792_v51  ;;  %5098 = vmatpush3.msra.mxu1 %v2613_v25 }
 0x15c   :  { %3617 = vperm.xlu0 %5243, %v6081_v46   ;;  %5099 = vmatprep.subr.mxu1 %v2611_v30 }
 0x15d   :  { %3597 = vperm.xlu1 %5244, %v6090_v4   ;;  %5100 = vmatpush3.msra.mxu1 %v2611_v30  ;;  %v2702_v6 = vpop.permute.xlu0 %2701 }
 0x15e   :  { %v2700_v8 = vpop.permute.xlu1 %2699  ;;  %5101 = vmatprep.mubr.msk.f32.mxu1 %vm478_vm0, %v1793_v63  ;;  %5104 = vmatprep.subr.mxu0 %v2702_v6 }
 0x15f   :  { %5102 = vmatmul.mubr.msk.f32.vlgmr.msra.gmra.mxu1 %vm478_vm0, %v1794_v0  ;;  %5105 = vmatpush3.msra.mxu0 %v2702_v6 }
 0x160   :  { %3625 = vperm.xlu0 %5243, %v6101_v10   ;;  %5106 = vmatprep.subr.mxu0 %v2700_v8 }
 0x161   :  { %3605 = vperm.xlu1 %5244, %v6110_v12   ;;  %5107 = vmatpush3.msra.mxu0 %v2700_v8  ;;  %v2791_v11 = vpop.permute.xlu0 %2790 }
 0x162   :  { %v2789_v14 = vpop.permute.xlu1 %2788  ;;  %5108 = vmatprep.mubr.msk.f32.mxu0 %vm478_vm0, %v1795_v7  ;;  %5111 = vmatprep.subr.mxu1 %v2791_v11 }
 0x163   :  { %5109 = vmatmul.mubr.msk.f32.vlgmr.msra.gmra.mxu0 %vm478_vm0, %v1796_v9  ;;  %5112 = vmatpush3.msra.mxu1 %v2791_v11 }
 0x164   :  { %3633 = vperm.xlu0 %5243, %v6121_v16   ;;  %5113 = vmatprep.subr.mxu1 %v2789_v14 }
 0x165   :  { %3613 = vperm.xlu1 %5244, %v6130_v52   ;;  %5114 = vmatpush3.msra.mxu1 %v2789_v14  ;;  %v2880_v59 = vpop.permute.xlu0 %2879 }
 0x166   :  { %v2878_v22 = vpop.permute.xlu1 %2877  ;;  %5115 = vmatprep.mubr.msk.f32.mxu1 %vm478_vm0, %v1797_v13  ;;  %5118 = vmatprep.subr.mxu0 %v2880_v59 }
 0x167   :  { %5116 = vmatmul.mubr.msk.f32.vlgmr.msra.gmra.mxu1 %vm478_vm0, %v1798_v18  ;;  %5119 = vmatpush3.msra.mxu0 %v2880_v59  ;;  %v5302_v18 = vld [vmem:[%s7230_s0 + $0xb0] sm:$0xff] }
 0x168   :  { %3637 = vperm.xlu0 %5243, %v6141_v60   ;;  %5120 = vmatprep.subr.mxu0 %v2878_v22 }
 0x169   :  { %3621 = vperm.xlu1 %5244, %v5294_v38   ;;  %5121 = vmatpush3.msra.mxu0 %v2878_v22  ;;  %v2969_v39 = vpop.permute.xlu0 %2968 }
 0x16a   :  { %v2967_v41 = vpop.permute.xlu1 %2966  ;;  %5122 = vmatprep.mubr.msk.f32.mxu0 %vm478_vm0, %v1799_v17  ;;  %5125 = vmatprep.subr.mxu1 %v2969_v39 }
 0x16b   :  { %5123 = vmatmul.mubr.msk.f32.vlgmr.msra.gmra.mxu0 %vm478_vm0, %v1800_v24  ;;  %5126 = vmatpush3.msra.mxu1 %v2969_v39 }
 0x16c   :  { %3641 = vperm.xlu0 %5243, %v6158_v47   ;;  %5127 = vmatprep.subr.mxu1 %v2967_v41 }
 0x16d   :  { %3629 = vperm.xlu1 %5244, %v6167_v54   ;;  %5128 = vmatpush3.msra.mxu1 %v2967_v41  ;;  %v3058_v62 = vpop.permute.xlu0 %3057 }
 0x16e   :  { %v3056_v34 = vpop.permute.xlu1 %3055  ;;  %5129 = vmatprep.mubr.msk.f32.mxu1 %vm478_vm0, %v1801_v53  ;;  %5132 = vmatprep.subr.mxu0 %v3058_v62 }
 0x16f   :  { %5130 = vmatmul.mubr.msk.f32.vlgmr.msra.gmra.mxu1 %vm478_vm0, %v1802_v42  ;;  %5133 = vmatpush3.msra.mxu0 %v3058_v62 }
 0x170   :  { %5249 = vset.pattern.permute.xlu0 %v7254_v48  ;;  %5134 = vmatprep.subr.mxu0 %v3056_v34 }
 0x171   :  { %5245 = vset.pattern.permute.xlu1 %v7254_v48  ;;  %3817 = vperm.xlu0 %5249, %v5294_v38   ;;  %v3147_v1 = vpop.permute.xlu0 %3146 }
 0x172   :  { %3753 = vperm.xlu1 %5245, %v6183_v43   ;;  %5135 = vmatpush3.msra.mxu0 %v3056_v34  ;;  %v3145_v3 = vpop.permute.xlu1 %3144 }
 0x173   :  { %5136 = vmatprep.mubr.msk.f32.mxu0 %vm478_vm0, %v1803_v31  ;;  %5139 = vmatprep.subr.mxu1 %v3147_v1 }
 0x174   :  { %5137 = vmatmul.mubr.msk.f32.vlgmr.msra.gmra.mxu0 %vm478_vm0, %v1804_v27  ;;  %5140 = vmatpush3.msra.mxu1 %v3147_v1 }
 0x175   :  { %5141 = vmatprep.subr.mxu1 %v3145_v3  ;;  %3825 = vperm.xlu0 %5249, %v6167_v54  }
 0x176   :  { %3757 = vperm.xlu1 %5245, %v5991_v29   ;;  %5142 = vmatpush3.msra.mxu1 %v3145_v3 }
 0x177   :  { %5143 = vmatprep.mubr.msk.f32.mxu1 %vm478_vm0, %v1805_v2 }
 0x178   :  { %5144 = vmatmul.mubr.msk.f32.vlgmr.msra.gmra.mxu1 %vm478_vm0, %v1806_v55 }
 0x179   :  { %3773 = vperm.xlu0 %5249, %v6201_v5  }
 0x17a   :  { %3821 = vperm.xlu1 %5245, %v6101_v10  }
 0x17d   :  { %3777 = vperm.xlu0 %5249, %v6050_v20  }
 0x17e   :  { %5246 = vset.pattern.permute.xlu1 %v7256_v33  ;;  %v6207_v56 = vpop.permute.xlu0 %3397 }
 0x17f   :  { %4013 = vperm.xlu1 %5246, %v5294_v38   ;;  %v6209_v49 = vpop.permute.xlu1 %3393 }
 0x181   :  { %3845 = vperm.xlu0 %5249, %v6214_v26  }
 0x182   :  { %v6217_v50 = vpop.permute.xlu0 %3409 }
 0x183   :  { %3953 = vperm.xlu1 %5246, %v5991_v29   ;;  %v6220_v21 = vpop.permute.xlu1 %3401 }
 0x185   :  { %3785 = vperm.xlu0 %5249, %v6070_v37  }
 0x186   :  { %v6223_v28 = vpop.permute.xlu0 %3417 }
 0x187   :  { %5247 = vset.pattern.permute.xlu1 %v7254_v48  ;;  %v6226_v40 = vpop.permute.xlu1 %3405 }
 0x188   :  { %3761 = vperm.xlu1 %5247, %v6010_v44  }
 0x189   :  { %3853 = vperm.xlu0 %5249, %v6232_v15   ;;  %v6296_v39 = vpop.f32.mrf.mxu0 }
 0x18a   :  { %v6235_v29 = vpop.permute.xlu0 %3425  ;;  %7307 = vst [vmem:[#allocation13_spill] sm:$0xff] %v6296_v39 }
 0x18b   :  { %v6237_v58 = vpop.permute.xlu1 %3413  ;;  %v6302_v53 = vpop.f32.mrf.mxu0 }
 0x18c   :  { %3765 = vperm.xlu1 %5247, %v5301_v45   ;;  %7309 = vst [vmem:[#allocation15_spill] sm:$0xff] %v6302_v53 }
 0x18e   :  { %v6245_v51 = vpop.permute.xlu0 %3433 }
 0x18f   :  { %v6242_v36 = vpop.permute.xlu1 %3421 }
 0x190   :  { %3829 = vperm.xlu1 %5247, %v6121_v16  }
 0x191   :  { %v6311_v62 = vpop.f32.mrf.mxu0 }
 0x192   :  { %v6251_v30 = vpop.permute.xlu0 %3441  ;;  %7313 = vst [vmem:[#allocation23_spill] sm:$0xff] %v6311_v62 }
 0x193   :  { %v6247_v25 = vpop.permute.xlu1 %3429  ;;  %7297 = vst [vmem:[#allocation5_spill] sm:$0xff] %v6251_v30 }
 0x194   :  { %7296 = vst [vmem:[#allocation8_spill] sm:$0xff] %v6247_v25  ;;  %5248 = vset.pattern.permute.xlu1 %v7256_v33 }
 0x195   :  { %3957 = vperm.xlu1 %5248, %v6010_v44  }
 0x196   :  { %v6258_v6 = vpop.permute.xlu0 %3449 }
 0x197   :  { %v6253_v63 = vpop.permute.xlu1 %3437  ;;  %7300 = vst [vmem:[#allocation12_spill] sm:$0xff] %v6258_v6  ;;  %v7326_v6 = vmov 5  }
 0x198   :  { %7298 = vst [vmem:[#allocation10_spill] sm:$0xff] %v6253_v63 }
 0x199   :  { %4021 = vperm.xlu1 %5248, %v6167_v54  }
 0x19a   :  { %v6263_v7 = vpop.permute.xlu0 %3457 }
 0x19b   :  { %v6256_v0 = vpop.permute.xlu1 %3445 }
 0x19c   :  { %7299 = vst [vmem:[#allocation6_spill] sm:$0xff] %v6256_v0 }
 0x19d   :  { %3961 = vperm.xlu1 %5248, %v5301_v45  }
 0x19e   :  { %v6271_v11 = vpop.permute.xlu0 %3465 }
 0x19f   :  { %v6260_v8 = vpop.permute.xlu1 %3453  ;;  %7304 = vst [vmem:[#allocation16_spill] sm:$0xff] %v6271_v11 }
 0x1a0   :  { %7301 = vst [vmem:[#allocation7_spill] sm:$0xff] %v6260_v8 }
 0x1a1   :  { %5250 = vset.pattern.permute.xlu1 %v7254_v48 }
 0x1a2   :  { %3769 = vperm.xlu1 %5250, %v6030_v35   ;;  %v6276_v13 = vpop.permute.xlu0 %3473 }
 0x1a3   :  { %v6266_v44 = vpop.permute.xlu1 %3461 }
 0x1a4   :  { %7302 = vst [vmem:[#allocation14_spill] sm:$0xff] %v6266_v44 }
 0x1a6   :  { %3833 = vperm.xlu1 %5250, %v6141_v60   ;;  %v6287_v17 = vpop.permute.xlu0 %3481 }
 0x1a7   :  { %v6269_v9 = vpop.permute.xlu1 %3469 }
 0x1a8   :  { %7303 = vst [vmem:[#allocation9_spill] sm:$0xff] %v6269_v9 }
 0x1aa   :  { %3837 = vperm.xlu1 %5250, %v6158_v47   ;;  %v6294_v38 = vpop.permute.xlu0 %3489 }
 0x1ab   :  { %v6274_v14 = vpop.permute.xlu1 %3477 }
 0x1ae   :  { %5251 = vset.pattern.permute.xlu1 %v7258_v61  ;;  %v6308_v54 = vpop.permute.xlu0 %3497 }
 0x1af   :  { %3645 = vperm.xlu1 %5251, %v5302_v18   ;;  %v6282_v59 = vpop.permute.xlu1 %3485  ;;  %7312 = vst [vmem:[#allocation22_spill] sm:$0xff] %v6308_v54 }
 0x1b2   :  { %v6317_v1 = vpop.permute.xlu0 %3505 }
 0x1b3   :  { %5252 = vset.pattern.permute.xlu1 %v7256_v33  ;;  %v6285_v22 = vpop.permute.xlu1 %3493  ;;  %7316 = vst [vmem:[#allocation26_spill] sm:$0xff] %v6317_v1 }
 0x1b4   :  { %7305 = vst [vmem:[#allocation11_spill] sm:$0xff] %v6285_v22  ;;  %4029 = vperm.xlu1 %5252, %v6141_v60   ;;  %v6306_v60 = vpop.f32.mrf.mxu1 }
 0x1b5   :  { %7311 = vst [vmem:[#allocation19_spill] sm:$0xff] %v6306_v60 }
 0x1b6   :  { %v6313_v34 = vpop.f32.mrf.mxu1  ;;  %v6331_v45 = vpop.permute.xlu0 %3513 }
 0x1b7   :  { %v6290_v24 = vpop.permute.xlu1 %3501  ;;  %7314 = vst [vmem:[#allocation24_spill] sm:$0xff] %v6313_v34  ;;  %7322 = vst [vmem:[#allocation32_spill] sm:$0xff] %v6331_v45 }
 0x1b8   :  { %7306 = vst [vmem:[#allocation18_spill] sm:$0xff] %v6290_v24  ;;  %5253 = vset.pattern.permute.xlu1 %v7258_v61  ;;  %v6322_v27 = vpop.f32.mrf.mxu1 }
 0x1b9   :  { %3649 = vperm.xlu1 %5253, %v6214_v26   ;;  %7318 = vst [vmem:[#allocation28_spill] sm:$0xff] %v6322_v27 }
 0x1ba   :  { %v6329_v55 = vpop.f32.mrf.mxu1 }
 0x1bb   :  { %v6298_v41 = vpop.permute.xlu1 %3509  ;;  %7321 = vst [vmem:[#allocation31_spill] sm:$0xff] %v6329_v55  ;;  %v6345_v0 = vpop.permute.xlu0 %3557 }
 0x1bc   :  { %7308 = vst [vmem:[#allocation20_spill] sm:$0xff] %v6298_v41  ;;  %v6340_v8 = vpop.f32.mrf.mxu1  ;;  %v7331_v41 = vmov 3  }
 0x1bd   :  { %5254 = vset.pattern.permute.xlu1 %v7256_v33  ;;  %7325 = vst [vmem:[#allocation35_spill] sm:$0xff] %v6340_v8 }
 0x1be   :  { %4033 = vperm.xlu1 %5254, %v6158_v47   ;;  %v6320_v47 = vpop.f32.mrf.mxu0  ;;  %v6349_v45 = vpop.f32.mrf.mxu1 }
 0x1bf   :  { %v6304_v42 = vpop.permute.xlu1 %3517  ;;  %7317 = vst [vmem:[#allocation27_spill] sm:$0xff] %v6320_v47  ;;  %7329 = vst [vmem:[#allocation38_spill] sm:$0xff] %v6349_v45  ;;  %v6359_v27 = vpop.permute.xlu0 %3569  ;;  %v7339_v47 = vmov 4  }
 0x1c0   :  { %7310 = vst [vmem:[#allocation17_spill] sm:$0xff] %v6304_v42  ;;  %v6327_v2 = vpop.f32.mrf.mxu0  ;;  %v6357_v8 = vpop.f32.mrf.mxu1 }
 0x1c1   :  { %7320 = vst [vmem:[#allocation30_spill] sm:$0xff] %v6327_v2  ;;  %7333 = vst [vmem:[#allocation41_spill] sm:$0xff] %v6357_v8 }
 0x1c2   :  { %5255 = vset.pattern.permute.xlu1 %v7254_v48  ;;  %v5303_v48 = vld [vmem:[%s7230_s0 + $0xc0] sm:$0xff]  ;;  %v6338_v42 = vpop.f32.mrf.mxu0 }
 0x1c3   :  { %3841 = vperm.xlu1 %5255, %v5302_v18   ;;  %7324 = vst [vmem:[#allocation34_spill] sm:$0xff] %v6338_v42  ;;  %v6371_v62 = vpop.permute.xlu0 %3577 }
 0x1c4   :  { %v6315_v31 = vpop.permute.xlu1 %3561  ;;  %v6347_v30 = vpop.f32.mrf.mxu0  ;;  %7338 = vst [vmem:[#allocation46_spill] sm:$0xff] %v6371_v62 }
 0x1c5   :  { %7315 = vst [vmem:[#allocation25_spill] sm:$0xff] %v6315_v31  ;;  %7328 = vst [vmem:[#allocation37_spill] sm:$0xff] %v6347_v30  ;;  %v6367_v30 = vpop.f32.mrf.mxu1 }
 0x1c6   :  { %v6355_v42 = vpop.f32.mrf.mxu0  ;;  %7336 = vst [vmem:[#allocation44_spill] sm:$0xff] %v6367_v30 }
 0x1c7   :  { %3781 = vperm.xlu1 %5255, %v6001_v23   ;;  %7332 = vst [vmem:[#allocation40_spill] sm:$0xff] %v6355_v42  ;;  %v6376_v8 = vpop.f32.mrf.mxu1 }
 0x1c8   :  { %v6324_v3 = vpop.permute.xlu1 %3565  ;;  %7340 = vst [vmem:[#allocation47_spill] sm:$0xff] %v6376_v8 }
 0x1c9   :  { %7319 = vst [vmem:[#allocation29_spill] sm:$0xff] %v6324_v3 }
 0x1cb   :  { %5256 = vset.pattern.permute.xlu1 %v7258_v61 }
 0x1cc   :  { %3653 = vperm.xlu1 %5256, %v5303_v48   ;;  %v6336_v33 = vpop.permute.xlu1 %3573 }
 0x1cd   :  { %7323 = vst [vmem:[#allocation33_spill] sm:$0xff] %v6336_v33 }
 0x1d0   :  { %5257 = vset.pattern.permute.xlu1 %v7326_v6  ;;  %v6343_v61 = vpop.permute.xlu1 %3581 }
 0x1d1   :  { %7327 = vst [vmem:[#allocation36_spill] sm:$0xff] %v6343_v61  ;;  %4037 = vperm.xlu1 %5257, %v5302_v18   ;;  %v6365_v18 = vpop.f32.mrf.mxu0 }
 0x1d2   :  { %7335 = vst [vmem:[#allocation43_spill] sm:$0xff] %v6365_v18  ;;  %v6384_v18 = vpop.permute.xlu0 %3585 }
 0x1d3   :  { %v6374_v42 = vpop.f32.mrf.mxu0  ;;  %7344 = vst [vmem:[#allocation51_spill] sm:$0xff] %v6384_v18  ;;  %v7375_v18 = vld [vmem:[#allocation21_spill] sm:$0xff] }
 0x1d4   :  { %v6351_v2 = vpop.permute.xlu1 %3589  ;;  %v3686_v3 = vsub.s32 3, %v7375_v18  ;;  %v4078_v9 = vsub.s32 5, %v7375_v18 }
 0x1d5   :  { %7330 = vst [vmem:[#allocation39_spill] sm:$0xff] %v6351_v2  ;;  %5258 = vset.pattern.permute.xlu1 %v7331_v41  ;;  %v6380_v53 = vpop.f32.mrf.mxu0 }
 0x1d6   :  { %3657 = vperm.xlu1 %5258, %v6232_v15   ;;  %7342 = vst [vmem:[#allocation49_spill] sm:$0xff] %v6380_v53  ;;  %v6402_v53 = vpop.permute.xlu0 %3593 }
 0x1d7   :  { %v6394_v8 = vpop.f32.mrf.mxu0  ;;  %7348 = vst [vmem:[#allocation55_spill] sm:$0xff] %v6402_v53 }
 0x1d8   :  { %v6361_v55 = vpop.permute.xlu1 %3597  ;;  %7347 = vst [vmem:[#allocation54_spill] sm:$0xff] %v6394_v8 }
 0x1d9   :  { %7334 = vst [vmem:[#allocation42_spill] sm:$0xff] %v6361_v55  ;;  %v6406_v60 = vpop.f32.mrf.mxu0 }
 0x1da   :  { %5259 = vset.pattern.permute.xlu1 %v7326_v6  ;;  %7350 = vst [vmem:[#allocation57_spill] sm:$0xff] %v6406_v60  ;;  %v6413_v8 = vpop.permute.xlu0 %3601 }
 0x1db   :  { %4041 = vperm.xlu1 %5259, %v6214_v26   ;;  %v6382_v26 = vpop.f32.mrf.mxu1  ;;  %7353 = vst [vmem:[#allocation60_spill] sm:$0xff] %v6413_v8 }
 0x1dc   :  { %v6369_v45 = vpop.permute.xlu1 %3605  ;;  %7343 = vst [vmem:[#allocation50_spill] sm:$0xff] %v6382_v26 }
 0x1dd   :  { %7337 = vst [vmem:[#allocation45_spill] sm:$0xff] %v6369_v45  ;;  %v6389_v45 = vpop.f32.mrf.mxu1 }
 0x1de   :  { %7345 = vst [vmem:[#allocation52_spill] sm:$0xff] %v6389_v45  ;;  %v6426_v61 = vpop.permute.xlu0 %3609 }
 0x1df   :  { %5260 = vset.pattern.permute.xlu1 %v7339_v47  ;;  %v6404_v26 = vpop.f32.mrf.mxu1  ;;  %7359 = vst [vmem:[#allocation66_spill] sm:$0xff] %v6426_v61 }
 0x1e0   :  { %3849 = vperm.xlu1 %5260, %v5303_v48   ;;  %v6378_v55 = vpop.permute.xlu1 %3613  ;;  %7349 = vst [vmem:[#allocation56_spill] sm:$0xff] %v6404_v26 }
 0x1e1   :  { %7341 = vst [vmem:[#allocation48_spill] sm:$0xff] %v6378_v55  ;;  %v6399_v55 = vld [vmem:[%s7230_s0 + $0xd0] sm:$0xff]  ;;  %v6411_v39 = vpop.f32.mrf.mxu1 }
 0x1e2   :  { %7352 = vst [vmem:[#allocation59_spill] sm:$0xff] %v6411_v39 }
 0x1e3   :  { %v6420_v53 = vpop.f32.mrf.mxu1 }
 0x1e4   :  { %3789 = vperm.xlu1 %5260, %v6021_v19   ;;  %v6387_v30 = vpop.permute.xlu1 %3621  ;;  %7356 = vst [vmem:[#allocation63_spill] sm:$0xff] %v6420_v53 }
 0x1e8   :  { %5261 = vset.pattern.permute.xlu1 %v7331_v41  ;;  %v6392_v34 = vpop.permute.xlu1 %3629 }
 0x1e9   :  { %7346 = vst [vmem:[#allocation53_spill] sm:$0xff] %v6392_v34  ;;  %3661 = vperm.xlu1 %5261, %v6399_v55   ;;  %v6415_v34 = vpop.f32.mrf.mxu0 }
 0x1ea   :  { %7354 = vst [vmem:[#allocation61_spill] sm:$0xff] %v6415_v34 }
 0x1eb   :  { %v6422_v26 = vpop.f32.mrf.mxu0 }
 0x1ec   :  { %7357 = vst [vmem:[#allocation64_spill] sm:$0xff] %v6422_v26 }
 0x1ed   :  { %5262 = vset.pattern.permute.xlu1 %v7326_v6  ;;  %v6409_v45 = vpop.permute.xlu1 %3753 }
 0x1ee   :  { %7351 = vst [vmem:[#allocation58_spill] sm:$0xff] %v6409_v45  ;;  %4045 = vperm.xlu1 %5262, %v5303_v48   ;;  %v6428_v45 = vpop.f32.mrf.mxu1  ;;  %v6430_v48 = vpop.f32.mrf.mxu0 }
 0x1ef   :  { %7360 = vst [vmem:[#allocation67_spill] sm:$0xff] %v6428_v45  ;;  %7361 = vst [vmem:[#allocation68_spill] sm:$0xff] %v6430_v48 }
 0x1f0   :  { %v6434_v34 = vpop.f32.mrf.mxu1 }
 0x1f1   :  { %v6417_v2 = vpop.permute.xlu1 %3757  ;;  %7362 = vst [vmem:[#allocation69_spill] sm:$0xff] %v6434_v34 }
 0x1f2   :  { %7355 = vst [vmem:[#allocation62_spill] sm:$0xff] %v6417_v2  ;;  %5263 = vset.pattern.permute.xlu1 %v7331_v41  ;;  %v6437_v2 = vpop.permute.xlu0 %3617 }
 0x1f3   :  { %7363 = vst [vmem:[#allocation70_spill] sm:$0xff] %v6437_v2 }
 0x1f5   :  { %v6424_v60 = vpop.permute.xlu1 %3821 }
 0x1f6   :  { %7358 = vst [vmem:[#allocation65_spill] sm:$0xff] %v6424_v60  ;;  %v6444_v48 = vpop.permute.xlu0 %3625 }
 0x1f7   :  { %7365 = vst [vmem:[#allocation72_spill] sm:$0xff] %v6444_v48 }
 0x1fa   :  { %v6432_v39 = vpop.permute.xlu1 %4013  ;;  %v5040_v8 = vpop.f32.mrf.mxu0 }
 0x1fb   :  { %3265 = vrot.lane.b32.xlu0 %v5040_v8, %s5341_s12 }
 0x1fc   :  { %v1887_v53 = vpop.f32.mrf.mxu0 }
 0x1fd   :  { %3263 = vrot.lane.b32.xlu1 %v1887_v53, %s5341_s12 }
 0x1fe   :  { %v6440_v26 = vpop.permute.xlu1 %3953  ;;  %v5047_v61 = vpop.f32.mrf.mxu1 }
 0x1ff   :  { %7364 = vst [vmem:[#allocation71_spill] sm:$0xff] %v6440_v26  ;;  %3269 = vrot.lane.b32.xlu0 %v5047_v61, %s5341_s12  ;;  %v6452_v26 = vpop.permute.xlu0 %3633 }
 0x200   :  { %v1976_v45 = vpop.f32.mrf.mxu1  ;;  %7368 = vst [vmem:[#allocation75_spill] sm:$0xff] %v6452_v26 }
 0x201   :  { %3267 = vrot.lane.b32.xlu1 %v1976_v45, %s5341_s12 }
 0x203   :  { %v6446_v60 = vpop.permute.xlu1 %3761  ;;  %v5054_v34 = vpop.f32.mrf.mxu0 }
 0x204   :  { %7366 = vst [vmem:[#allocation73_spill] sm:$0xff] %v6446_v60  ;;  %3273 = vrot.lane.b32.xlu0 %v5054_v34, %s5341_s12  ;;  %v3638_v34 = vpop.permute.xlu0 %3637 }
 0x205   :  { %v2065_v8 = vpop.f32.mrf.mxu0 }
 0x206   :  { %3271 = vrot.lane.b32.xlu1 %v2065_v8, %s5341_s12 }
 0x207   :  { %v6450_v2 = vpop.permute.xlu1 %3765  ;;  %v5061_v53 = vpop.f32.mrf.mxu1 }
 0x208   :  { %7367 = vst [vmem:[#allocation74_spill] sm:$0xff] %v6450_v2  ;;  %3277 = vrot.lane.b32.xlu0 %v5061_v53, %s5341_s12  ;;  %v3642_v26 = vpop.permute.xlu0 %3641 }
 0x209   :  { %v2154_v61 = vpop.f32.mrf.mxu1 }
 0x20a   :  { %3275 = vrot.lane.b32.xlu1 %v2154_v61, %s5341_s12 }
 0x20b   :  { %v6456_v45 = vpop.permute.xlu1 %3829  ;;  %v5068_v48 = vpop.f32.mrf.mxu0 }
 0x20c   :  { %7369 = vst [vmem:[#allocation76_spill] sm:$0xff] %v6456_v45  ;;  %3281 = vrot.lane.b32.xlu0 %v5068_v48, %s5341_s12 }
 0x20d   :  { %v2243_v60 = vpop.f32.mrf.mxu0 }
 0x20e   :  { %3279 = vrot.lane.b32.xlu1 %v2243_v60, %s5341_s12 }
 0x20f   :  { %v5075_v8 = vpop.f32.mrf.mxu1 }
 0x210   :  { %v6460_v24 = vpop.permute.xlu1 %3957  ;;  %3285 = vrot.lane.b32.xlu0 %v5075_v8, %s5341_s12 }
 0x211   :  { %7370 = vst [vmem:[#allocation77_spill] sm:$0xff] %v6460_v24  ;;  %v2332_v2 = vpop.f32.mrf.mxu1  ;;  %v6471_v24 = vpop.permute.xlu0 %3817 }
 0x212   :  { %3283 = vrot.lane.b32.xlu1 %v2332_v2, %s5341_s12 }
 0x213   :  { %v5082_v53 = vpop.f32.mrf.mxu0 }
 0x214   :  { %v6464_v61 = vpop.permute.xlu1 %4021  ;;  %3289 = vrot.lane.b32.xlu0 %v5082_v53, %s5341_s12 }
 0x215   :  { %7371 = vst [vmem:[#allocation78_spill] sm:$0xff] %v6464_v61  ;;  %v2421_v45 = vpop.f32.mrf.mxu0 }
 0x216   :  { %3287 = vrot.lane.b32.xlu1 %v2421_v45, %s5341_s12  ;;  %v6478_v45 = vpop.permute.xlu0 %3825 }
 0x217   :  { %v5089_v48 = vpop.f32.mrf.mxu1  ;;  %7374 = vst [vmem:[#allocation81_spill] sm:$0xff] %v6478_v45 }
 0x218   :  { %v6468_v22 = vpop.permute.xlu1 %3961  ;;  %3293 = vrot.lane.b32.xlu0 %v5089_v48, %s5341_s12 }
 0x219   :  { %7372 = vst [vmem:[#allocation79_spill] sm:$0xff] %v6468_v22  ;;  %v2510_v60 = vpop.f32.mrf.mxu1 }
 0x21a   :  { %3291 = vrot.lane.b32.xlu1 %v2510_v60, %s5341_s12  ;;  %v3522_v60 = vsub.s32 2, %v7375_v18  ;;  %v6487_v45 = vpop.permute.xlu0 %3773 }
 0x21b   :  { %v5096_v2 = vpop.f32.mrf.mxu0  ;;  %7376 = vst [vmem:[#allocation82_spill] sm:$0xff] %v6487_v45 }
 0x21c   :  { %3297 = vrot.lane.b32.xlu0 %v5096_v2, %s5341_s12 }
 0x21d   :  { %v6475_v8 = vpop.permute.xlu1 %3769  ;;  %v2599_v61 = vpop.f32.mrf.mxu0 }
 0x21e   :  { %7373 = vst [vmem:[#allocation80_spill] sm:$0xff] %v6475_v8  ;;  %3295 = vrot.lane.b32.xlu1 %v2599_v61, %s5341_s12  ;;  %v3882_v61 = vsub.s32 4, %v7375_v18 }
 0x21f   :  { %v5103_v53 = vpop.f32.mrf.mxu1 }
 0x220   :  { %3301 = vrot.lane.b32.xlu0 %v5103_v53, %s5341_s12 }
 0x221   :  { %v3834_v22 = vpop.permute.xlu1 %3833  ;;  %v2688_v48 = vpop.f32.mrf.mxu1 }
 0x222   :  { %3299 = vrot.lane.b32.xlu1 %v2688_v48, %s5341_s12  ;;  %v6492_v48 = vld [vmem:[%s7233_s3] sm:$0xff] }
 0x223   :  { %v5110_v33 = vpop.f32.mrf.mxu0  ;;  %v6495_v1 = vrot.slane %v6492_v48, %v3522_v60  ;;  %v6498_v31 = vrot.slane %v6492_v48, %v3686_v3  ;;  %v6505_v54 = vrot.slane %v6492_v48, %v3882_v61 }
 0x224   :  { %3305 = vrot.lane.b32.xlu0 %v5110_v33, %s5341_s12 }
 0x225   :  { %v3838_v2 = vpop.permute.xlu1 %3837  ;;  %v2777_v8 = vpop.f32.mrf.mxu0  ;;  %7377 = vst [vmem:[#allocation83_spill] sm:$0xff] %v6495_v1  ;;  %v3708_v45 = vmul.f32 %v6498_v31, %v3638_v34  ;;  %v3904_v3 = vmul.f32 %v6505_v54, %v3834_v22 }
 0x226   :  { %3303 = vrot.lane.b32.xlu1 %v2777_v8, %s5341_s12  ;;  %v3544_v8 = vmul.f32 %v6495_v1, %v6276_v13  ;;  %v6514_v13 = vrot.slane %v6492_v48, %v4078_v9 }
 0x227   :  { %v5117_v53 = vpop.f32.mrf.mxu1 }
 0x228   :  { %3309 = vrot.lane.b32.xlu0 %v5117_v53, %s5341_s12  ;;  %v6511_v53 = vpop.permute.xlu0 %3777  ;;  %v3740_v11 = vadd.f32 %v3708_v45, %v3544_v8  ;;  %v3709_v45 = vmul.f32 %v6498_v31, %v3642_v26 }
 0x229   :  { %v2866_v33 = vpop.f32.mrf.mxu1  ;;  %7378 = vst [vmem:[#allocation84_spill] sm:$0xff] %v6511_v53 }
 0x22a   :  { %v3646_v44 = vpop.permute.xlu1 %3645  ;;  %3307 = vrot.lane.b32.xlu1 %v2866_v33, %s5341_s12  ;;  %v3936_v63 = vadd.f32 %v3904_v3, %v3740_v11 }
 0x22b   :  { %v5124_v60 = vpop.f32.mrf.mxu0 }
 0x22c   :  { %3313 = vrot.lane.b32.xlu0 %v5124_v60, %s5341_s12  ;;  %v3846_v60 = vpop.permute.xlu0 %3845 }
 0x22d   :  { %v2955_v62 = vpop.f32.mrf.mxu0  ;;  %v3907_v53 = vmul.f32 %v6505_v54, %v3846_v60 }
 0x22e   :  { %3311 = vrot.lane.b32.xlu1 %v2955_v62, %s5341_s12  ;;  %v3547_v62 = vmul.f32 %v6495_v1, %v6282_v59 }
 0x22f   :  { %v4030_v34 = vpop.permute.xlu1 %4029  ;;  %v5131_v61 = vpop.f32.mrf.mxu1 }
 0x230   :  { %v4100_v25 = vmul.f32 %v6514_v13, %v4030_v34  ;;  %3317 = vrot.lane.b32.xlu0 %v5131_v61, %s5341_s12 }
 0x231   :  { %v3044_v33 = vpop.f32.mrf.mxu1 }
 0x232   :  { %v6519_v22 = vadd.f32 %v4100_v25, %v3936_v63  ;;  %3315 = vrot.lane.b32.xlu1 %v3044_v33, %s5341_s12  ;;  %v3545_v25 = vmul.f32 %v6495_v1, %v6274_v14  ;;  %v3905_v63 = vmul.f32 %v6505_v54, %v3838_v2  ;;  %v3546_v2 = vmul.f32 %v6495_v1, %v6287_v17 }
 0x234   :  { %7379 = vst [vmem:[#allocation85_spill] sm:$0xff] %v6519_v22  ;;  %v5138_v8 = vpop.f32.mrf.mxu0  ;;  %v3650_v9 = vpop.permute.xlu1 %3649  ;;  %v3741_v26 = vadd.f32 %v3709_v45, %v3545_v25  ;;  %v3710_v22 = vmul.f32 %v6498_v31, %v3646_v44 }
 0x235   :  { %v3711_v11 = vmul.f32 %v6498_v31, %v3650_v9  ;;  %3321 = vrot.lane.b32.xlu0 %v5138_v8, %s5341_s12 }
 0x236   :  { %v3133_v3 = vpop.f32.mrf.mxu0  ;;  %v3937_v60 = vadd.f32 %v3905_v63, %v3741_v26 }
 0x237   :  { %v3743_v34 = vadd.f32 %v3711_v11, %v3547_v62  ;;  %3319 = vrot.lane.b32.xlu1 %v3133_v3, %s5341_s12  ;;  %v3742_v62 = vadd.f32 %v3710_v22, %v3546_v2  ;;  %v6547_v11 = vld [vmem:[%s7230_s0 + $0xd8] sm:$0xff]  ;;  %v6561_v22 = vld [vmem:[%s7230_s0 + $0xe8] sm:$0xff] }
 0x238   :  { %v5145_v61 = vpop.f32.mrf.mxu1  ;;  %v4251_v3 = vld [vmem:[%s7234_s4 + $0x38] sm:$0xff] }
 0x239   :  { %3325 = vrot.lane.b32.xlu0 %v5145_v61, %s5341_s12  ;;  %v4034_v59 = vpop.permute.xlu1 %4033  ;;  %v6533_v33 = vadd.f32 %v3907_v53, %v3743_v34  ;;  %5146 = vmatprep.subr.mxu0 %v4251_v3  ;;  %v4250_v34 = vld [vmem:[%s7234_s4 + $0x30] sm:$0xff]  ;;  %v4249_v61 = vld [vmem:[%s7234_s4 + $0x28] sm:$0xff]  ;;  %v4247_v2 = vld [vmem:[%s7234_s4 + $0x18] sm:$0xff] }
 0x23a   :  { %v4101_v9 = vmul.f32 %v6514_v13, %v4034_v59  ;;  %v3222_v8 = vpop.f32.mrf.mxu1  ;;  %5210 = vmatprep.subr.mxu1 %v4251_v3  ;;  %5147 = vmatpush3.msra.mxu0 %v4251_v3  ;;  %v6582_v59 = vld [vmem:[%s7230_s0 + $0xf8] sm:$0xff] }
 0x23b   :  { %3323 = vrot.lane.b32.xlu1 %v3222_v8, %s5341_s12  ;;  %5218 = vmatpush3.msra.mxu1 %v4251_v3  ;;  %v4248_v8 = vld [vmem:[%s7234_s4 + $0x20] sm:$0xff] }
 0x23c   :  { %v6538_v14 = vadd.f32 %v4101_v9, %v3937_v60  ;;  %5148 = vmatprep.subr.mxu0 %v4250_v34  ;;  %5211 = vmatprep.subr.mxu1 %v4250_v34  ;;  %v6590_v9 = vld [vmem:[%s7230_s0 + $0xe0] sm:$0xff] }
 0x23d   :  { %3793 = vperm.xlu0 %5249, %v6090_v4   ;;  %5149 = vmatpush3.msra.mxu0 %v4250_v34 }
 0x23e   :  { %v3842_v45 = vpop.permute.xlu1 %3841  ;;  %5150 = vmatprep.subr.mxu0 %v4249_v61  ;;  %5219 = vmatpush3.msra.mxu1 %v4250_v34  ;;  %v6631_v34 = vpop.permute.xlu0 %3785 }
 0x23f   :  { %v3906_v53 = vmul.f32 %v6505_v54, %v3842_v45  ;;  %3665 = vperm.xlu1 %5263, %v6547_v11   ;;  %5151 = vmatpush3.msra.mxu0 %v4249_v61 }
 0x240   :  { %5212 = vmatprep.subr.mxu1 %v4249_v61  ;;  %5152 = vmatprep.subr.mxu0 %v4248_v8 }
 0x241   :  { %v3938_v44 = vadd.f32 %v3906_v53, %v3742_v62  ;;  %3861 = vperm.xlu0 %5249, %v6547_v11   ;;  %5153 = vmatpush3.msra.mxu0 %v4248_v8 }
 0x242   :  { %v6551_v25 = vpop.permute.xlu1 %3781  ;;  %5220 = vmatpush3.msra.mxu1 %v4249_v61  ;;  %5154 = vmatprep.subr.mxu0 %v4247_v2  ;;  %v6636_v61 = vpop.permute.xlu0 %3853 }
 0x243   :  { %5264 = vset.pattern.permute.xlu1 %v7326_v6  ;;  %5213 = vmatprep.subr.mxu1 %v4248_v8 }
 0x244   :  { %4049 = vperm.xlu1 %5264, %v6232_v15   ;;  %5155 = vmatpush3.msra.mxu0 %v4247_v2 }
 0x245   :  { %3801 = vperm.xlu0 %5249, %v6110_v12   ;;  %5221 = vmatpush3.msra.mxu1 %v4248_v8 }
 0x246   :  { %5214 = vmatprep.subr.mxu1 %v4247_v2 }
 0x247   :  { %v3654_v17 = vpop.permute.xlu1 %3653  ;;  %5222 = vmatpush3.msra.mxu1 %v4247_v2 }
 0x248   :  { %5265 = vset.pattern.permute.xlu1 %v7339_v47  ;;  %v3712_v53 = vmul.f32 %v6498_v31, %v3654_v17  ;;  %v4245_v17 = vld [vmem:[%s7234_s4 + $0x8] sm:$0xff] }
 0x249   :  { %3857 = vperm.xlu1 %5265, %v6399_v55   ;;  %3869 = vperm.xlu0 %5249, %v6561_v22  }
 0x24c   :  { %v4038_v63 = vpop.permute.xlu1 %4037 }
 0x24d   :  { %v4102_v15 = vmul.f32 %v6514_v13, %v4038_v63  ;;  %3797 = vperm.xlu1 %5265, %v6041_v57   ;;  %3809 = vperm.xlu0 %5249, %v6130_v52  }
 0x24f   :  { %v6573_v26 = vadd.f32 %v4102_v15, %v3938_v44  ;;  %v4246_v44 = vld [vmem:[%s7234_s4 + $0x10] sm:$0xff] }
 0x250   :  { %5156 = vmatprep.subr.mxu0 %v4246_v44  ;;  %5215 = vmatprep.subr.mxu1 %v4246_v44 }
 0x251   :  { %5266 = vset.pattern.permute.xlu1 %v7331_v41  ;;  %3877 = vperm.xlu0 %5249, %v6582_v59   ;;  %v6585_v60 = vpop.permute.xlu1 %3657 }
 0x252   :  { %3669 = vperm.xlu1 %5266, %v6590_v9   ;;  %5157 = vmatpush3.msra.mxu0 %v4246_v44 }
 0x253   :  { %5158 = vmatprep.subr.mxu0 %v4245_v17  ;;  %5223 = vmatpush3.msra.mxu1 %v4246_v44 }
 0x254   :  { %5159 = vmatpush3.msra.mxu0 %v4245_v17  ;;  %5216 = vmatprep.subr.mxu1 %v4245_v17 }
 0x255   :  { %5276 = vset.pattern.permute.xlu0 %v7326_v6  ;;  %5224 = vmatpush3.msra.mxu1 %v4245_v17  ;;  %v4096_v17 = vmul.f32 %v6514_v13, %v6432_v39 }
 0x256   :  { %5267 = vset.pattern.permute.xlu1 %v7326_v6  ;;  %3949 = vperm.xlu0 %5276, %v6183_v43   ;;  %v4042_v45 = vpop.permute.xlu1 %4041  ;;  %v3548_v43 = vmul.f32 %v6495_v1, %v6294_v38 }
 0x257   :  { %v4103_v62 = vmul.f32 %v6514_v13, %v4042_v45  ;;  %4053 = vperm.xlu1 %5267, %v6399_v55  }
 0x258   :  { %v3744_v3 = vadd.f32 %v3712_v53, %v3548_v43 }
 0x259   :  { %v6609_v63 = vadd.f32 %v4103_v62, %v6533_v33 }
 0x25a   :  { %4017 = vperm.xlu0 %5276, %v6101_v10   ;;  %v4244_v10 = vld [vmem:[%s7234_s4] sm:$0xff] }
 0x25b   :  { %7380 = vst [vmem:[#allocation86_spill] sm:$0xff] %v6609_v63  ;;  %5268 = vset.pattern.permute.xlu1 %v7331_v41  ;;  %v3850_v55 = vpop.permute.xlu1 %3849  ;;  %5160 = vmatprep.subr.mxu0 %v4244_v10  ;;  %v7428_v63 = vld [vmem:[#allocation75_spill] sm:$0xff] }
 0x25c   :  { %v3908_v33 = vmul.f32 %v6505_v54, %v3850_v55  ;;  %3673 = vperm.xlu1 %5268, %v6561_v22   ;;  %5161 = vmatpush3.msra.mxu0 %v4244_v10 }
 0x25d   :  { %5217 = vmatprep.subr.mxu1 %v4244_v10 }
 0x25e   :  { %v3940_v38 = vadd.f32 %v3908_v33, %v3744_v3  ;;  %4025 = vperm.xlu0 %5276, %v6121_v16   ;;  %5225 = vmatpush3.msra.mxu1 %v4244_v10 }
 0x25f   :  { %v6624_v15 = vpop.permute.xlu1 %3789 }
 0x260   :  { %7381 = vst [vmem:[#allocation87_spill] sm:$0xff] %v6624_v15  ;;  %5269 = vset.pattern.permute.xlu1 %v7326_v6  ;;  %v7422_v15 = vld [vmem:[#allocation11_spill] sm:$0xff] }
 0x261   :  { %4057 = vperm.xlu1 %5269, %v6547_v11  }
 0x262   :  { %3965 = vperm.xlu0 %5276, %v6030_v35  }
 0x264   :  { %v6629_v16 = vpop.permute.xlu1 %3661 }
 0x265   :  { %5270 = vset.pattern.permute.xlu1 %v7339_v47 }
 0x266   :  { %3865 = vperm.xlu1 %5270, %v6590_v9   ;;  %3969 = vperm.xlu0 %5276, %v6201_v5   ;;  %v5310_v5 = vld [vmem:[%s7230_s0 + $0xf0] sm:$0xff] }
 0x269   :  { %v4046_v11 = vpop.permute.xlu1 %4045 }
 0x26a   :  { %v4104_v35 = vmul.f32 %v6514_v13, %v4046_v11  ;;  %3805 = vperm.xlu1 %5270, %v6061_v32   ;;  %3973 = vperm.xlu0 %5276, %v6050_v20  }
 0x26c   :  { %v6641_v8 = vadd.f32 %v4104_v35, %v3940_v38 }
 0x26d   :  { %v6643_v2 = vpop.permute.xlu0 %3265 }
 0x26e   :  { %7382 = vst [vmem:[#allocation88_spill] sm:$0xff] %v6641_v8  ;;  %5271 = vset.pattern.permute.xlu1 %v7331_v41  ;;  %3977 = vperm.xlu0 %5276, %v6001_v23  }
 0x26f   :  { %3677 = vperm.xlu1 %5271, %v5310_v5   ;;  %v6650_v45 = vpop.permute.xlu1 %3263 }
 0x271   :  { %v6652_v62 = vpop.permute.xlu0 %3269 }
 0x272   :  { %3981 = vperm.xlu0 %5276, %v6070_v37  }
 0x273   :  { %5272 = vset.pattern.permute.xlu1 %v7326_v6  ;;  %v6656_v20 = vpop.permute.xlu1 %3267 }
 0x274   :  { %4061 = vperm.xlu1 %5272, %v6590_v9  }
 0x276   :  { %3985 = vperm.xlu0 %5276, %v6021_v19   ;;  %v6660_v23 = vpop.permute.xlu0 %3273 }
 0x277   :  { %7383 = vst [vmem:[#allocation89_spill] sm:$0xff] %v6660_v23 }
 0x278   :  { %5273 = vset.pattern.permute.xlu1 %v7331_v41  ;;  %v6663_v53 = vpop.permute.xlu1 %3271 }
 0x279   :  { %3681 = vperm.xlu1 %5273, %v6582_v59  }
 0x27a   :  { %3989 = vperm.xlu0 %5276, %v6090_v4   ;;  %v6667_v44 = vpop.permute.xlu0 %3277 }
 0x27b   :  { %7384 = vst [vmem:[#allocation90_spill] sm:$0xff] %v6667_v44  ;;  %v7420_v44 = vld [vmem:[#allocation51_spill] sm:$0xff] }
 0x27c   :  { %v6669_v37 = vpop.permute.xlu1 %3275 }
 0x27d   :  { %7385 = vst [vmem:[#allocation91_spill] sm:$0xff] %v6669_v37  ;;  %5274 = vset.pattern.permute.xlu1 %v7326_v6  ;;  %v7423_v37 = vld [vmem:[#allocation18_spill] sm:$0xff] }
 0x27e   :  { %4065 = vperm.xlu1 %5274, %v6561_v22   ;;  %3993 = vperm.xlu0 %5276, %v6041_v57   ;;  %v6674_v19 = vpop.permute.xlu0 %3281  ;;  %v3540_v57 = vmul.f32 %v6495_v1, %v6263_v7  ;;  %v3704_v22 = vmul.f32 %v6498_v31, %v6387_v30  ;;  %v4178_v30 = vsub.s32 6, %v7375_v18  ;;  %v3525_v18 = vmul.f32 %v6495_v1, %v6207_v56 }
 0x27f   :  { %7386 = vst [vmem:[#allocation92_spill] sm:$0xff] %v6674_v19  ;;  %v3532_v56 = vmul.f32 %v6495_v1, %v6235_v29  ;;  %v7413_v19 = vld [vmem:[#allocation9_spill] sm:$0xff] }
 0x280   :  { %v6676_v9 = vpop.permute.xlu1 %3279  ;;  %v6711_v10 = vrot.slane %v6492_v48, %v4178_v30 }
 0x281   :  { %7387 = vst [vmem:[#allocation93_spill] sm:$0xff] %v6676_v9  ;;  %v7419_v9 = vld [vmem:[#allocation29_spill] sm:$0xff] }
 0x282   :  { %5275 = vset.pattern.permute.xlu1 %v7339_v47  ;;  %3997 = vperm.xlu0 %5276, %v6110_v12   ;;  %v6680_v41 = vpop.permute.xlu0 %3285  ;;  %v3900_v12 = vmul.f32 %v6505_v54, %v6471_v24 }
 0x283   :  { %7388 = vst [vmem:[#allocation94_spill] sm:$0xff] %v6680_v41  ;;  %3873 = vperm.xlu1 %5275, %v5310_v5   ;;  %v7410_v41 = vld [vmem:[#allocation16_spill] sm:$0xff] }
 0x284   :  { %v6682_v4 = vpop.permute.xlu1 %3283 }
 0x285   :  { %7389 = vst [vmem:[#allocation95_spill] sm:$0xff] %v6682_v4  ;;  %v7412_v4 = vld [vmem:[#allocation14_spill] sm:$0xff] }
 0x286   :  { %4001 = vperm.xlu0 %5276, %v6061_v32   ;;  %v6685_v43 = vpop.permute.xlu0 %3289  ;;  %v3736_v32 = vadd.f32 %v3704_v22, %v3540_v57 }
 0x287   :  { %7390 = vst [vmem:[#allocation96_spill] sm:$0xff] %v6685_v43  ;;  %3813 = vperm.xlu1 %5275, %v6081_v46   ;;  %v3530_v43 = vmul.f32 %v6495_v1, %v6223_v28  ;;  %v7406_v28 = vld [vmem:[#allocation8_spill] sm:$0xff] }
 0x288   :  { %v6692_v47 = vpop.permute.xlu1 %3287  ;;  %v3932_v3 = vadd.f32 %v3900_v12, %v3736_v32 }
 0x289   :  { %7391 = vst [vmem:[#allocation97_spill] sm:$0xff] %v6692_v47  ;;  %v3688_v47 = vmul.f32 %v6498_v31, %v6345_v0  ;;  %v3541_v0 = vmul.f32 %v6495_v1, %v7412_v4  ;;  %v3690_v4 = vmul.f32 %v6498_v31, %v7419_v9  ;;  %v7426_v9 = vld [vmem:[#allocation39_spill] sm:$0xff] }
 0x28a   :  { %4069 = vperm.xlu0 %5276, %v5310_v5   ;;  %v6696_v55 = vpop.permute.xlu0 %3293  ;;  %v4128_v38 = vadd.f32 %v4096_v17, %v3932_v3  ;;  %v3696_v23 = vmul.f32 %v6498_v31, %v7426_v9  ;;  %v7437_v9 = vld [vmem:[#allocation81_spill] sm:$0xff] }
 0x28b   :  { %7392 = vst [vmem:[#allocation98_spill] sm:$0xff] %v6696_v55  ;;  %5277 = vset.pattern.permute.xlu1 %v7326_v6  ;;  %v3526_v55 = vmul.f32 %v6495_v1, %v6220_v21  ;;  %v3531_v21 = vmul.f32 %v6495_v1, %v6242_v36  ;;  %v3542_v36 = vmul.f32 %v6495_v1, %v7410_v41  ;;  %v7417_v41 = vld [vmem:[#allocation26_spill] sm:$0xff] }
 0x28c   :  { %4005 = vperm.xlu1 %5277, %v6130_v52   ;;  %v6702_v7 = vpop.permute.xlu1 %3291 }
 0x28d   :  { %7393 = vst [vmem:[#allocation99_spill] sm:$0xff] %v6702_v7 }
 0x28e   :  { %v6705_v33 = vpop.permute.xlu0 %3297 }
 0x290   :  { %4009 = vperm.xlu1 %5277, %v6081_v46   ;;  %v3296_v24 = vpop.permute.xlu1 %3295 }
 0x291   :  { %v3376_v6 = vsel %vm3359_vm1, %v6374_v42, %v3296_v24 }
 0x292   :  { %v4160_v39 = vadd.f32 %v4128_v38, %v3376_v6  ;;  %v6713_v52 = vpop.permute.xlu0 %3301 }
 0x294   :  { %v4196_v11 = vadd.f32 %v6711_v10, %v4160_v39  ;;  %4073 = vperm.xlu1 %5277, %v6582_v59   ;;  %v6717_v35 = vpop.permute.xlu1 %3299 }
 0x296   :  { %v4228_v5 = vmax.f32 %v4196_v11, 0.0  ;;  %v6719_v57 = vpop.permute.xlu0 %3305 }
 0x298   :  { %v6721_v46 = vpop.permute.xlu1 %3303  ;;  %5186 = vmatprep.mubr.msk.f32.mxu1 %vm4256_vm2, %v4228_v5  ;;  %v3524_v5 = vmul.f32 %v6495_v1, %v6209_v49  ;;  %v3529_v49 = vmul.f32 %v6495_v1, %v6237_v58  ;;  %v7408_v58 = vld [vmem:[#allocation10_spill] sm:$0xff] }
 0x299   :  { %v6786_v29 = vmul.f32 %v6495_v1, %v7408_v58 }
 0x29a   :  { %v6724_v42 = vpop.permute.xlu0 %3309 }
 0x29b   :  { %7409 = vst [vmem:[#allocation10_spill] sm:$0xff] %v6786_v29 }
 0x29c   :  { %v6726_v48 = vpop.permute.xlu1 %3307 }
 0x29e   :  { %v6728_v22 = vpop.permute.xlu0 %3313 }
 0x29f   :  { %7394 = vst [vmem:[#allocation100_spill] sm:$0xff] %v6728_v22 }
 0x2a0   :  { %v6730_v12 = vpop.permute.xlu1 %3311 }
 0x2a1   :  { %7395 = vst [vmem:[#allocation101_spill] sm:$0xff] %v6730_v12  ;;  %v7429_v12 = vld [vmem:[#allocation53_spill] sm:$0xff] }
 0x2a2   :  { %v6732_v32 = vpop.permute.xlu0 %3317 }
 0x2a3   :  { %7396 = vst [vmem:[#allocation102_spill] sm:$0xff] %v6732_v32  ;;  %v6820_v32 = vmul.f32 %v6495_v1, %v7423_v37  ;;  %v3706_v37 = vmul.f32 %v6498_v31, %v7429_v12  ;;  %v3902_v12 = vmul.f32 %v6505_v54, %v7437_v9 }
 0x2a4   :  { %v6734_v59 = vpop.permute.xlu1 %3315 }
 0x2a5   :  { %7397 = vst [vmem:[#allocation103_spill] sm:$0xff] %v6734_v59  ;;  %7424 = vst [vmem:[#allocation14_spill] sm:$0xff] %v6820_v32  ;;  %v7443_v32 = vld [vmem:[#allocation82_spill] sm:$0xff] }
 0x2a7   :  { %v6736_v17 = vpop.permute.xlu0 %3321 }
 0x2a8   :  { %7398 = vst [vmem:[#allocation104_spill] sm:$0xff] %v6736_v17  ;;  %v6782_v17 = vmul.f32 %v6495_v1, %v7406_v28 }
 0x2a9   :  { %v6738_v3 = vpop.permute.xlu1 %3319 }
 0x2aa   :  { %7399 = vst [vmem:[#allocation105_spill] sm:$0xff] %v6738_v3  ;;  %7407 = vst [vmem:[#allocation8_spill] sm:$0xff] %v6782_v17  ;;  %v7414_v3 = vld [vmem:[#allocation22_spill] sm:$0xff]  ;;  %v7421_v17 = vld [vmem:[#allocation33_spill] sm:$0xff] }
 0x2ab   :  { %v6740_v30 = vpop.permute.xlu0 %3325  ;;  %v6798_v28 = vmul.f32 %v6495_v1, %v7414_v3  ;;  %v3692_v3 = vmul.f32 %v6498_v31, %v7421_v17 }
 0x2ac   :  { %7400 = vst [vmem:[#allocation106_spill] sm:$0xff] %v6740_v30  ;;  %v3528_v30 = vmul.f32 %v6495_v1, %v6217_v50  ;;  %v6774_v50 = vmul.f32 %v6495_v1, %v6245_v51 }
 0x2ad   :  { %v6742_v38 = vpop.permute.xlu1 %3323 }
 0x2ae   :  { %7401 = vst [vmem:[#allocation107_spill] sm:$0xff] %v6742_v38  ;;  %v3527_v38 = vmul.f32 %v6495_v1, %v6226_v40  ;;  %7405 = vst [vmem:[#allocation111_spill] sm:$0xff] %v6774_v50  ;;  %v3691_v40 = vmul.f32 %v6498_v31, %v6359_v27  ;;  %v3543_v27 = vmul.f32 %v6495_v1, %v7413_v19  ;;  %v7415_v50 = vld [vmem:[#allocation25_spill] sm:$0xff] }
 0x2af   :  { %v3689_v58 = vmul.f32 %v6498_v31, %v7415_v50  ;;  %v3695_v19 = vmul.f32 %v6498_v31, %v7420_v44  ;;  %v3549_v50 = vmul.f32 %v6495_v1, %v7422_v15  ;;  %v7427_v44 = vld [vmem:[#allocation72_spill] sm:$0xff]  ;;  %v3707_v15 = vmul.f32 %v6498_v31, %v7428_v63 }
 0x2b0   :  { %v3723_v59 = vadd.f32 %v3691_v40, %v3527_v38  ;;  %v3705_v8 = vmul.f32 %v6498_v31, %v7427_v44  ;;  %v7438_v44 = vld [vmem:[#allocation71_spill] sm:$0xff] }
 0x2b1   :  { %v3721_v17 = vadd.f32 %v3689_v58, %v3525_v18  ;;  %v6838_v40 = vadd.f32 %v3695_v19, %v3531_v21  ;;  %v7436_v58 = vld [vmem:[#allocation58_spill] sm:$0xff]  ;;  %v6852_v21 = vadd.f32 %v3696_v23, %v3532_v56  ;;  %v7444_v23 = vld [vmem:[#allocation77_spill] sm:$0xff] }
 0x2b2   :  { %v3884_v63 = vmul.f32 %v6505_v54, %v7436_v58  ;;  %v7441_v58 = vld [vmem:[#allocation79_spill] sm:$0xff] }
 0x2b3   :  { %7433 = vst [vmem:[#allocation25_spill] sm:$0xff] %v6838_v40  ;;  %v4083_v40 = vmul.f32 %v6514_v13, %v7441_v58  ;;  %v7448_v58 = vld [vmem:[#allocation84_spill] sm:$0xff] }
 0x2b8   :  { %v6744_v24 = vpop.permute.xlu0 %3793 }
 0x2b9   :  { %7402 = vst [vmem:[#allocation108_spill] sm:$0xff] %v6744_v24 }
 0x2ba   :  { %v6746_v6 = vpop.permute.xlu1 %3665 }
 0x2bc   :  { %v6748_v39 = vpop.permute.xlu0 %3861 }
 0x2bd   :  { %7403 = vst [vmem:[#allocation109_spill] sm:$0xff] %v6748_v39  ;;  %v7442_v39 = vld [vmem:[#allocation65_spill] sm:$0xff] }
 0x2bf   :  { %v6750_v11 = vpop.permute.xlu1 %4049 }
 0x2c0   :  { %v6760_v7 = vpop.permute.xlu0 %3801 }
 0x2c1   :  { %7404 = vst [vmem:[#allocation110_spill] sm:$0xff] %v6760_v7  ;;  %v7411_v7 = vld [vmem:[#allocation46_spill] sm:$0xff] }
 0x2c2   :  { %v3693_v51 = vmul.f32 %v6498_v31, %v7411_v7  ;;  %v6808_v7 = vmul.f32 %v6495_v1, %v7417_v41  ;;  %v7430_v1 = vld [vmem:[#allocation62_spill] sm:$0xff] }
 0x2c4   :  { %v6802_v29 = vpop.permute.xlu1 %3857  ;;  %v6804_v24 = vpop.permute.xlu0 %3869  ;;  %7418 = vst [vmem:[#allocation46_spill] sm:$0xff] %v6808_v7  ;;  %v3725_v41 = vadd.f32 %v3693_v51, %v3529_v49  ;;  %v7425_v7 = vld [vmem:[#allocation36_spill] sm:$0xff]  ;;  %v3722_v49 = vadd.f32 %v3690_v4, %v3526_v55  ;;  %v3724_v51 = vadd.f32 %v3692_v3, %v3528_v30  ;;  %v3737_v30 = vadd.f32 %v3705_v8, %v3541_v0  ;;  %v7440_v4 = vld [vmem:[#allocation73_spill] sm:$0xff] }
 0x2c5   :  { %7416 = vst [vmem:[#allocation16_spill] sm:$0xff] %v6804_v24  ;;  %v3720_v24 = vadd.f32 %v3688_v47, %v3524_v5  ;;  %v3694_v22 = vmul.f32 %v6498_v31, %v7425_v7  ;;  %v3885_v47 = vmul.f32 %v6505_v54, %v7430_v1  ;;  %v7434_v7 = vld [vmem:[#allocation55_spill] sm:$0xff]  ;;  %v4081_v1 = vmul.f32 %v6514_v13, %v7438_v44 }
 0x2c6   :  { %v6842_v18 = vmul.f32 %v6498_v31, %v7434_v7  ;;  %v3886_v19 = vmul.f32 %v6505_v54, %v7440_v4  ;;  %v3739_v3 = vadd.f32 %v3707_v15, %v3543_v27  ;;  %v3738_v7 = vadd.f32 %v3706_v37, %v3542_v36 }
 0x2c7   :  { %v3726_v55 = vadd.f32 %v3694_v22, %v3530_v43  ;;  %v3901_v44 = vmul.f32 %v6505_v54, %v7442_v39  ;;  %v3889_v43 = vmul.f32 %v6505_v54, %v7443_v32  ;;  %v4082_v8 = vmul.f32 %v6514_v13, %v7444_v23  ;;  %v7445_v22 = vld [vmem:[#allocation13_spill] sm:$0xff] }
 0x2c8   :  { %v6834_v38 = vpop.permute.xlu1 %3797  ;;  %v6836_v5 = vpop.permute.xlu0 %3809  ;;  %7435 = vst [vmem:[#allocation26_spill] sm:$0xff] %v6842_v18  ;;  %v3917_v18 = vadd.f32 %v3885_v47, %v3721_v17  ;;  %v3361_v56 = vsel %vm3359_vm1, %v7445_v22, %v6643_v2  ;;  %v3916_v0 = vadd.f32 %v3884_v63, %v3720_v24  ;;  %v3934_v27 = vadd.f32 %v3902_v12, %v3738_v7  ;;  %v7446_v47 = vld [vmem:[#allocation78_spill] sm:$0xff]  ;;  %v7449_v24 = vld [vmem:[#allocation24_spill] sm:$0xff] }
 0x2c9   :  { %7431 = vst [vmem:[#allocation9_spill] sm:$0xff] %v6834_v38  ;;  %7432 = vst [vmem:[#allocation22_spill] sm:$0xff] %v6836_v5  ;;  %v7439_v38 = vld [vmem:[#allocation74_spill] sm:$0xff]  ;;  %v3918_v37 = vadd.f32 %v3886_v19, %v3722_v49  ;;  %v4098_v39 = vmul.f32 %v6514_v13, %v7446_v47  ;;  %v3713_v32 = vmul.f32 %v6498_v31, %v6585_v60 }
 0x2ca   :  { %v3887_v5 = vmul.f32 %v6505_v54, %v7439_v38  ;;  %v4113_v17 = vadd.f32 %v4081_v1, %v3917_v18  ;;  %v7447_v38 = vld [vmem:[#allocation19_spill] sm:$0xff]  ;;  %v3890_v2 = vmul.f32 %v6505_v54, %v7448_v58  ;;  %v6883_v49 = vadd.f32 %v3889_v43, %v3725_v41  ;;  %v7450_v18 = vld [vmem:[#allocation76_spill] sm:$0xff]  ;;  %v7451_v19 = vld [vmem:[#allocation50_spill] sm:$0xff] }
 0x2cb   :  { %v3363_v4 = vsel %vm3359_vm1, %v7447_v38, %v6652_v62  ;;  %v3903_v63 = vmul.f32 %v6505_v54, %v7450_v18  ;;  %v4114_v60 = vadd.f32 %v4082_v8, %v3918_v37  ;;  %v3909_v62 = vmul.f32 %v6505_v54, %v6636_v61 }
 0x2cc   :  { %v6858_v9 = vpop.permute.xlu0 %3877  ;;  %v3919_v15 = vadd.f32 %v3887_v5, %v3723_v59  ;;  %v4145_v22 = vadd.f32 %v4113_v17, %v3361_v56  ;;  %v3362_v59 = vsel %vm3359_vm1, %v7449_v24, %v6656_v20  ;;  %v3933_v5 = vadd.f32 %v3901_v44, %v3737_v30  ;;  %v7452_v30 = vld [vmem:[#allocation80_spill] sm:$0xff] }
 0x2cd   :  { %v6869_v36 = vpop.permute.xlu1 %3669  ;;  %v4130_v20 = vadd.f32 %v4098_v39, %v3934_v27  ;;  %v3888_v41 = vmul.f32 %v6505_v54, %v7452_v30  ;;  %v3745_v44 = vadd.f32 %v3713_v32, %v3549_v50  ;;  %v4146_v43 = vadd.f32 %v4114_v60, %v3362_v59  ;;  %v7453_v27 = vld [vmem:[#allocation15_spill] sm:$0xff]  ;;  %v7454_v32 = vld [vmem:[#allocation54_spill] sm:$0xff] }
 0x2ce   :  { %v4115_v23 = vadd.f32 %v4083_v40, %v3919_v15  ;;  %v3378_v40 = vsel %vm3359_vm1, %v7451_v19, %v6717_v35  ;;  %v6895_v17 = vadd.f32 %v3890_v2, %v3726_v55  ;;  %v3714_v8 = vmul.f32 %v6498_v31, %v6629_v16 }
 0x2cf   :  { %v4181_v61 = vadd.f32 %v6711_v10, %v4145_v22  ;;  %v6902_v35 = vmul.f32 %v6505_v54, %v6631_v34  ;;  %v3935_v37 = vadd.f32 %v3903_v63, %v3739_v3  ;;  %v3360_v47 = vsel %vm3359_vm1, %v7453_v27, %v6650_v45  ;;  %v7457_v63 = vld [vmem:[#allocation85_spill] sm:$0xff] }
 0x2d0   :  { %v4147_v1 = vadd.f32 %v4115_v23, %v3363_v4  ;;  %v4162_v39 = vadd.f32 %v4130_v20, %v3378_v40  ;;  %v3380_v16 = vsel %vm3359_vm1, %v7454_v32, %v6721_v46  ;;  %v3920_v4 = vadd.f32 %v3888_v41, %v3724_v51  ;;  %v7455_v46 = vld [vmem:[#allocation43_spill] sm:$0xff]  ;;  %v7460_v41 = vld [vmem:[#allocation56_spill] sm:$0xff] }
 0x2d1   :  { %v3950_v12 = vpop.permute.xlu0 %3949  ;;  %v6914_v34 = vmul.f32 %v6505_v54, %v6551_v25  ;;  %v3941_v3 = vadd.f32 %v3909_v62, %v3745_v44  ;;  %v4182_v58 = vadd.f32 %v6711_v10, %v4146_v43  ;;  %v3746_v2 = vadd.f32 %v3714_v8, %v6798_v28  ;;  %v7456_v25 = vld [vmem:[#allocation49_spill] sm:$0xff] }
 0x2d2   :  { %v4080_v7 = vmul.f32 %v6514_v13, %v3950_v12  ;;  %v4054_v56 = vpop.permute.xlu1 %4053  ;;  %v4183_v55 = vadd.f32 %v6711_v10, %v4147_v1  ;;  %v4213_v23 = vmax.f32 %v4181_v61, 0.0  ;;  %v3377_v59 = vsel %vm3359_vm1, %v7455_v46, %v6705_v33  ;;  %v7459_v33 = vld [vmem:[#allocation47_spill] sm:$0xff] }
 0x2d3   :  { %v4198_v51 = vadd.f32 %v6711_v10, %v4162_v39  ;;  %v3381_v18 = vsel %vm3359_vm1, %v7456_v25, %v6719_v57  ;;  %v4164_v60 = vadd.f32 %v7457_v63, %v3380_v16  ;;  %v4214_v40 = vmax.f32 %v4182_v58, 0.0  ;;  %v7465_v58 = vld [vmem:[#allocation61_spill] sm:$0xff] }
 0x2d4   :  { %v4112_v15 = vadd.f32 %v4080_v7, %v3916_v0  ;;  %v4215_v62 = vmax.f32 %v4183_v55, 0.0  ;;  %v3379_v20 = vsel %vm3359_vm1, %v7459_v33, %v6713_v52  ;;  %v3715_v57 = vmul.f32 %v6498_v31, %v6746_v6  ;;  %v7461_v52 = vld [vmem:[#allocation52_spill] sm:$0xff]  ;;  %v7462_v55 = vld [vmem:[#allocation14_spill] sm:$0xff] }
 0x2d5   :  { %v4018_v50 = vpop.permute.xlu0 %4017  ;;  %v4165_v30 = vadd.f32 %v6538_v14, %v3381_v18  ;;  %v3382_v44 = vsel %vm3359_vm1, %v7460_v41, %v6726_v48  ;;  %v3383_v27 = vsel %vm3359_vm1, %v7461_v52, %v6724_v42  ;;  %v3910_v14 = vmul.f32 %v6505_v54, %v6802_v29  ;;  %v7463_v42 = vld [vmem:[#allocation109_spill] sm:$0xff] }
 0x2d6   :  { %v4144_v38 = vadd.f32 %v4112_v15, %v3360_v47  ;;  %v4097_v0 = vmul.f32 %v6514_v13, %v4018_v50  ;;  %v4200_v15 = vadd.f32 %v6711_v10, %v4164_v60  ;;  %v4105_v48 = vmul.f32 %v6514_v13, %v6750_v11 }
 0x2d7   :  { %v6917_v45 = vpop.permute.xlu1 %3673  ;;  %v4166_v50 = vadd.f32 %v6573_v26, %v3382_v44  ;;  %v3747_v32 = vadd.f32 %v3715_v57, %v7462_v55  ;;  %v3911_v16 = vmul.f32 %v6505_v54, %v7463_v42  ;;  %v4106_v29 = vmul.f32 %v6514_v13, %v4054_v56  ;;  %v7466_v26 = vld [vmem:[#allocation86_spill] sm:$0xff]  ;;  %v7472_v44 = vld [vmem:[#allocation103_spill] sm:$0xff] }
 0x2d8   :  { %v4180_v22 = vadd.f32 %v6711_v10, %v4144_v38  ;;  %v4129_v24 = vadd.f32 %v4097_v0, %v3933_v5  ;;  %v7458_v5 = vld [vmem:[#allocation27_spill] sm:$0xff]  ;;  %v4201_v38 = vadd.f32 %v6711_v10, %v4165_v30  ;;  %v7464_v0 = vld [vmem:[#allocation101_spill] sm:$0xff]  ;;  %v4167_v46 = vadd.f32 %v7466_v26, %v3383_v27 }
 0x2d9   :  { %v4026_v12 = vpop.permute.xlu0 %4025  ;;  %v3364_v7 = vsel %vm3359_vm1, %v7458_v5, %v6663_v53  ;;  %v4230_v53 = vmax.f32 %v4198_v51, 0.0  ;;  %v3384_v11 = vsel %vm3359_vm1, %v7465_v58, %v7464_v0  ;;  %v4137_v18 = vadd.f32 %v4105_v48, %v3941_v3  ;;  %v7469_v5 = vld [vmem:[#allocation23_spill] sm:$0xff]  ;;  %v7471_v30 = vld [vmem:[#allocation57_spill] sm:$0xff] }
 0x2da   :  { %v4212_v1 = vmax.f32 %v4180_v22, 0.0  ;;  %v4161_v28 = vadd.f32 %v4129_v24, %v3377_v59  ;;  %v4099_v19 = vmul.f32 %v6514_v13, %v4026_v12  ;;  %v4232_v24 = vmax.f32 %v4200_v15, 0.0  ;;  %v7476_v55 = vld [vmem:[#allocation59_spill] sm:$0xff] }
 0x2db   :  { %v3942_v59 = vadd.f32 %v3910_v14, %v3746_v2  ;;  %v7468_v2 = vld [vmem:[#allocation89_spill] sm:$0xff]  ;;  %v4203_v3 = vadd.f32 %v6711_v10, %v4167_v46  ;;  %v3716_v58 = vmul.f32 %v6498_v31, %v6869_v36 }
 0x2dc   :  { %v4197_v43 = vadd.f32 %v6711_v10, %v4161_v28  ;;  %v4131_v8 = vadd.f32 %v4099_v19, %v3935_v37  ;;  %v4058_v61 = vpop.permute.xlu1 %4057  ;;  %5162 = vmatprep.mubr.msk.f32.mxu0 %vm4256_vm2, %v4212_v1  ;;  %v7467_v1 = vld [vmem:[#allocation88_spill] sm:$0xff]  ;;  %v3943_v19 = vadd.f32 %v3911_v16, %v3747_v32  ;;  %v3365_v33 = vsel %vm3359_vm1, %v7469_v5, %v7468_v2  ;;  %v7484_v5 = vld [vmem:[#allocation46_spill] sm:$0xff] }
 0x2dd   :  { %5163 = vmatmul.mubr.msk.f32.vlgmr.msra.gmra.mxu0 %vm4256_vm2, %v4213_v23  ;;  %v3966_v6 = vpop.permute.xlu0 %3965  ;;  %v4107_v51 = vmul.f32 %v6514_v13, %v4058_v61  ;;  %v4168_v28 = vadd.f32 %v7467_v1, %v3384_v11  ;;  %v4235_v0 = vmax.f32 %v4203_v3, 0.0 }
 0x2de   :  { %v4229_v37 = vmax.f32 %v4197_v43, 0.0  ;;  %v4163_v47 = vadd.f32 %v4131_v8, %v3379_v20  ;;  %v4084_v39 = vmul.f32 %v6514_v13, %v3966_v6  ;;  %5165 = vmatprep.mubr.msk.f32.mxu0 %vm4256_vm2, %v4214_v40  ;;  %v4138_v40 = vadd.f32 %v4106_v29, %v3942_v59  ;;  %v7473_v43 = vld [vmem:[#allocation63_spill] sm:$0xff]  ;;  %v7474_v6 = vld [vmem:[#allocation25_spill] sm:$0xff] }
 0x2df   :  { %v4233_v20 = vmax.f32 %v4201_v38, 0.0  ;;  %v3386_v8 = vsel %vm3359_vm1, %v7473_v43, %v7472_v44  ;;  %v4139_v61 = vadd.f32 %v4107_v51, %v3943_v19  ;;  %v3923_v48 = vadd.f32 %v6914_v34, %v7474_v6  ;;  %v7477_v29 = vld [vmem:[#allocation91_spill] sm:$0xff]  ;;  %v7482_v19 = vld [vmem:[#allocation90_spill] sm:$0xff] }
 0x2e0   :  { %v4199_v23 = vadd.f32 %v6711_v10, %v4163_v47  ;;  %v4116_v22 = vadd.f32 %v4084_v39, %v3920_v4  ;;  %5187 = vmatmul.mubr.msk.f32.vlgmr.msra.gmra.mxu1 %vm4256_vm2, %v4229_v37  ;;  %v4202_v4 = vadd.f32 %v6711_v10, %v4166_v50  ;;  %v4204_v47 = vadd.f32 %v6711_v10, %v4168_v28  ;;  %v7475_v50 = vld [vmem:[#allocation102_spill] sm:$0xff]  ;;  %v7478_v38 = vld [vmem:[#allocation31_spill] sm:$0xff] }
 0x2e1   :  { %v3866_v25 = vpop.permute.xlu1 %3865  ;;  %5166 = vmatmul.mubr.msk.f32.gmra.mxu0 %vm4256_vm2, %v4215_v62  ;;  %5189 = vmatprep.mubr.msk.f32.mxu1 %vm4256_vm2, %v4230_v53  ;;  %v3970_v56 = vpop.permute.xlu0 %3969  ;;  %v4170_v39 = vadd.f32 %v4138_v40, %v3386_v8  ;;  %v3387_v32 = vsel %vm3359_vm1, %v7476_v55, %v7475_v50  ;;  %v3366_v34 = vsel %vm3359_vm1, %v7478_v38, %v7477_v29  ;;  %v7479_v59 = vld [vmem:[#allocation87_spill] sm:$0xff]  ;;  %v7483_v40 = vld [vmem:[#allocation28_spill] sm:$0xff] }
 0x2e2   :  { %v4231_v63 = vmax.f32 %v4199_v23, 0.0  ;;  %v4148_v60 = vadd.f32 %v4116_v22, %v3364_v7  ;;  %v4085_v12 = vmul.f32 %v6514_v13, %v3970_v56  ;;  %v7470_v7 = vld [vmem:[#allocation100_spill] sm:$0xff]  ;;  %v4234_v37 = vmax.f32 %v4202_v4, 0.0 }
 0x2e3   :  { %v3385_v41 = vsel %vm3359_vm1, %v7471_v30, %v7470_v7  ;;  %v4171_v11 = vadd.f32 %v4139_v61, %v3387_v32  ;;  %v3893_v51 = vmul.f32 %v6505_v54, %v7479_v59  ;;  %v4236_v56 = vmax.f32 %v4204_v47, 0.0  ;;  %v7485_v30 = vld [vmem:[#allocation42_spill] sm:$0xff]  ;;  %v7491_v38 = vld [vmem:[#allocation60_spill] sm:$0xff] }
 0x2e4   :  { %v4184_v62 = vadd.f32 %v6711_v10, %v4148_v60  ;;  %v4117_v57 = vadd.f32 %v4085_v12, %v6883_v49  ;;  %5190 = vmatmul.mubr.msk.f32.gmra.mxu1 %vm4256_vm2, %v4231_v63  ;;  %v4169_v52 = vadd.f32 %v4137_v18, %v3385_v41  ;;  %v4206_v18 = vadd.f32 %v6711_v10, %v4170_v39  ;;  %v7480_v63 = vld [vmem:[#allocation8_spill] sm:$0xff]  ;;  %v7481_v60 = vld [vmem:[#allocation26_spill] sm:$0xff] }
 0x2e5   :  { %v6986_v53 = vpop.permute.xlu1 %3805  ;;  %5192 = vmatprep.mubr.msk.f32.mxu1 %vm4256_vm2, %v4232_v24  ;;  %v3974_v15 = vpop.permute.xlu0 %3973  ;;  %v3912_v36 = vmul.f32 %v6505_v54, %v3866_v25  ;;  %v3729_v12 = vadd.f32 %v7481_v60, %v7480_v63  ;;  %v3924_v28 = vadd.f32 %v6902_v35, %v6852_v21  ;;  %v3367_v2 = vsel %vm3359_vm1, %v7483_v40, %v7482_v19  ;;  %v7495_v59 = vld [vmem:[#allocation92_spill] sm:$0xff]  ;;  %v7498_v40 = vld [vmem:[#allocation5_spill] sm:$0xff] }
 0x2e6   :  { %v4216_v49 = vmax.f32 %v4184_v62, 0.0  ;;  %v4149_v27 = vadd.f32 %v4117_v57, %v3365_v33  ;;  %v4086_v14 = vmul.f32 %v6514_v13, %v3974_v15  ;;  %v4205_v22 = vadd.f32 %v6711_v10, %v4169_v52  ;;  %v7486_v52 = vld [vmem:[#allocation93_spill] sm:$0xff] }
 0x2e7   :  { %v3748_v33 = vadd.f32 %v3716_v58, %v7484_v5  ;;  %v4207_v25 = vadd.f32 %v6711_v10, %v4171_v11  ;;  %v3698_v41 = vmul.f32 %v6498_v31, %v7485_v30  ;;  %v3925_v21 = vadd.f32 %v3893_v51, %v3729_v12  ;;  %v7493_v11 = vld [vmem:[#allocation105_spill] sm:$0xff]  ;;  %v7496_v51 = vld [vmem:[#allocation30_spill] sm:$0xff] }
 0x2e8   :  { %v4185_v42 = vadd.f32 %v6711_v10, %v4149_v27  ;;  %v4118_v16 = vadd.f32 %v4086_v14, %v6895_v17  ;;  %5168 = vmatprep.mubr.msk.f32.mxu0 %vm4256_vm2, %v4216_v49  ;;  %5193 = vmatmul.mubr.msk.f32.gmra.mxu1 %vm4256_vm2, %v4233_v20  ;;  %v4237_v62 = vmax.f32 %v4205_v22, 0.0  ;;  %v4238_v35 = vmax.f32 %v4206_v18, 0.0  ;;  %v7487_v49 = vld [vmem:[#allocation34_spill] sm:$0xff]  ;;  %v7488_v14 = vld [vmem:[#allocation108_spill] sm:$0xff] }
 0x2e9   :  { %5195 = vmatprep.mubr.msk.f32.mxu1 %vm4256_vm2, %v4234_v37  ;;  %v3978_v23 = vpop.permute.xlu0 %3977  ;;  %v3944_v44 = vadd.f32 %v3912_v36, %v3748_v33  ;;  %v3368_v27 = vsel %vm3359_vm1, %v7487_v49, %v7486_v52  ;;  %v3894_v6 = vmul.f32 %v6505_v54, %v7488_v14  ;;  %v4239_v37 = vmax.f32 %v4207_v25, 0.0  ;;  %v7497_v36 = vld [vmem:[#allocation9_spill] sm:$0xff]  ;;  %v7499_v5 = vld [vmem:[#allocation10_spill] sm:$0xff] }
 0x2ea   :  { %v4217_v24 = vmax.f32 %v4185_v42, 0.0  ;;  %v4150_v17 = vadd.f32 %v4118_v16, %v3366_v34  ;;  %v4087_v26 = vmul.f32 %v6514_v13, %v3978_v23  ;;  %v7008_v46 = vpop.permute.xlu1 %3677  ;;  %v7489_v42 = vld [vmem:[#allocation20_spill] sm:$0xff]  ;;  %v7490_v16 = vld [vmem:[#allocation83_spill] sm:$0xff]  ;;  %v3699_v34 = vmul.f32 %v6498_v31, %v7491_v38  ;;  %v7500_v25 = vld [vmem:[#allocation45_spill] sm:$0xff] }
 0x2eb   :  { %v3553_v29 = vmul.f32 %v7490_v16, %v7489_v42  ;;  %v7494_v23 = vld [vmem:[#allocation68_spill] sm:$0xff]  ;;  %v3895_v63 = vmul.f32 %v6505_v54, %v7497_v36  ;;  %v7508_v38 = vld [vmem:[#allocation35_spill] sm:$0xff] }
 0x2ec   :  { %v4186_v4 = vadd.f32 %v6711_v10, %v4150_v17  ;;  %v4119_v1 = vadd.f32 %v4087_v26, %v3923_v48  ;;  %5169 = vmatmul.mubr.msk.f32.gmra.mxu0 %vm4256_vm2, %v4217_v24  ;;  %5196 = vmatmul.mubr.msk.f32.gmra.mxu1 %vm4256_vm2, %v4235_v0  ;;  %v3717_v48 = vmul.f32 %v6498_v31, %v6917_v45  ;;  %v7492_v0 = vld [vmem:[#allocation111_spill] sm:$0xff] }
 0x2ed   :  { %5198 = vmatprep.mubr.msk.f32.mxu1 %vm4256_vm2, %v4236_v56  ;;  %v3982_v20 = vpop.permute.xlu0 %3981  ;;  %v3730_v58 = vadd.f32 %v3698_v41, %v7492_v0  ;;  %v3388_v45 = vsel %vm3359_vm1, %v7494_v23, %v7493_v11  ;;  %v3369_v56 = vsel %vm3359_vm1, %v7496_v51, %v7495_v59  ;;  %v3731_v33 = vadd.f32 %v3699_v34, %v7499_v5  ;;  %v7502_v41 = vld [vmem:[#allocation95_spill] sm:$0xff]  ;;  %v7509_v0 = vld [vmem:[#allocation104_spill] sm:$0xff] }
 0x2ee   :  { %v4218_v57 = vmax.f32 %v4186_v4, 0.0  ;;  %v4151_v3 = vadd.f32 %v4119_v1, %v3367_v2  ;;  %v4088_v7 = vmul.f32 %v6514_v13, %v3982_v20  ;;  %v3749_v60 = vadd.f32 %v3717_v48, %v3553_v29  ;;  %v7505_v48 = vld [vmem:[#allocation66_spill] sm:$0xff]  ;;  %v7515_v5 = vld [vmem:[#allocation40_spill] sm:$0xff] }
 0x2ef   :  { %v4062_v43 = vpop.permute.xlu1 %4061  ;;  %v3926_v18 = vadd.f32 %v3894_v6, %v3730_v58  ;;  %v3536_v2 = vmul.f32 %v7490_v16, %v7498_v40  ;;  %v3700_v20 = vmul.f32 %v6498_v31, %v7500_v25  ;;  %v7507_v29 = vld [vmem:[#allocation94_spill] sm:$0xff]  ;;  %v7510_v58 = vld [vmem:[#allocation64_spill] sm:$0xff] }
 0x2f0   :  { %v4187_v8 = vadd.f32 %v6711_v10, %v4151_v3  ;;  %v4120_v61 = vadd.f32 %v4088_v7, %v3924_v28  ;;  %v4108_v15 = vmul.f32 %v6514_v13, %v4062_v43  ;;  %5171 = vmatprep.mubr.msk.f32.mxu0 %vm4256_vm2, %v4218_v57  ;;  %5199 = vmatmul.mubr.msk.f32.gmra.mxu1 %vm4256_vm2, %v4237_v62  ;;  %v7501_v62 = vld [vmem:[#allocation16_spill] sm:$0xff] }
 0x2f1   :  { %5201 = vmatprep.mubr.msk.f32.mxu1 %vm4256_vm2, %v4238_v35  ;;  %v3986_v47 = vpop.permute.xlu0 %3985  ;;  %v3913_v57 = vmul.f32 %v6505_v54, %v7501_v62  ;;  %v3371_v34 = vsel %vm3359_vm1, %v7508_v38, %v7507_v29  ;;  %v3389_v11 = vsel %vm3359_vm1, %v7510_v58, %v7509_v0  ;;  %v7521_v58 = vld [vmem:[#allocation17_spill] sm:$0xff] }
 0x2f2   :  { %v4219_v39 = vmax.f32 %v4187_v8, 0.0  ;;  %v4152_v50 = vadd.f32 %v4120_v61, %v3368_v27  ;;  %v4140_v55 = vadd.f32 %v4108_v15, %v3944_v44  ;;  %v4089_v32 = vmul.f32 %v6514_v13, %v3986_v47  ;;  %v7504_v44 = vld [vmem:[#allocation110_spill] sm:$0xff] }
 0x2f3   :  { %v3896_v43 = vmul.f32 %v6505_v54, %v7504_v44  ;;  %v3927_v8 = vadd.f32 %v3895_v63, %v3731_v33  ;;  %v3945_v15 = vadd.f32 %v3913_v57, %v3749_v60  ;;  %v3732_v47 = vadd.f32 %v3700_v20, %v3536_v2  ;;  %v7512_v63 = vld [vmem:[#allocation32_spill] sm:$0xff]  ;;  %v7514_v2 = vld [vmem:[#allocation97_spill] sm:$0xff] }
 0x2f4   :  { %v4188_v22 = vadd.f32 %v6711_v10, %v4152_v50  ;;  %v4172_v24 = vadd.f32 %v4140_v55, %v3388_v45  ;;  %v4121_v17 = vadd.f32 %v4089_v32, %v3925_v21  ;;  %v7052_v26 = vpop.permute.xlu1 %3681  ;;  %5172 = vmatmul.mubr.msk.f32.gmra.mxu0 %vm4256_vm2, %v4219_v39  ;;  %5202 = vmatmul.mubr.msk.f32.gmra.mxu1 %vm4256_vm2, %v4239_v37  ;;  %v7503_v21 = vld [vmem:[#allocation38_spill] sm:$0xff] }
 0x2f5   :  { %v3990_v12 = vpop.permute.xlu0 %3989  ;;  %v3370_v35 = vsel %vm3359_vm1, %v7503_v21, %v7502_v41  ;;  %v3701_v37 = vmul.f32 %v6498_v31, %v7505_v48  ;;  %v7506_v39 = vld [vmem:[#allocation6_spill] sm:$0xff]  ;;  %v3928_v23 = vadd.f32 %v3896_v43, %v3732_v47  ;;  %v3897_v45 = vmul.f32 %v6505_v54, %v6986_v53 }
 0x2f6   :  { %v4220_v4 = vmax.f32 %v4188_v22, 0.0  ;;  %v4208_v1 = vadd.f32 %v6711_v10, %v4172_v24  ;;  %v4153_v28 = vadd.f32 %v4121_v17, %v3369_v56  ;;  %v4090_v19 = vmul.f32 %v6514_v13, %v3990_v12  ;;  %v7516_v41 = vld [vmem:[#allocation22_spill] sm:$0xff] }
 0x2f7   :  { %v3537_v50 = vmul.f32 %v7490_v16, %v7506_v39  ;;  %v3554_v60 = vmul.f32 %v7490_v16, %v7512_v63  ;;  %v3372_v33 = vsel %vm3359_vm1, %v7515_v5, %v7514_v2  ;;  %v3898_v21 = vmul.f32 %v6505_v54, %v7516_v41  ;;  %v7520_v39 = vld [vmem:[#allocation7_spill] sm:$0xff] }
 0x2f8   :  { %v4240_v3 = vmax.f32 %v4208_v1, 0.0  ;;  %v4189_v7 = vadd.f32 %v6711_v10, %v4153_v28  ;;  %v4122_v30 = vadd.f32 %v4090_v19, %v3926_v18  ;;  %5174 = vmatprep.mubr.msk.f32.mxu0 %vm4256_vm2, %v4220_v4  ;;  %v7511_v18 = vld [vmem:[#allocation12_spill] sm:$0xff]  ;;  %v3718_v4 = vmul.f32 %v6498_v31, %v7008_v46 }
 0x2f9   :  { %v4066_v61 = vpop.permute.xlu1 %4065  ;;  %v3994_v52 = vpop.permute.xlu0 %3993  ;;  %v3538_v36 = vmul.f32 %v7490_v16, %v7511_v18  ;;  %v3733_v12 = vadd.f32 %v3701_v37, %v3537_v50  ;;  %v7513_v19 = vld [vmem:[#allocation48_spill] sm:$0xff]  ;;  %v3539_v50 = vmul.f32 %v7490_v16, %v7520_v39 }
 0x2fa   :  { %v4221_v49 = vmax.f32 %v4189_v7, 0.0  ;;  %v4154_v27 = vadd.f32 %v4122_v30, %v3370_v35  ;;  %v4109_v14 = vmul.f32 %v6514_v13, %v4066_v61  ;;  %v4091_v6 = vmul.f32 %v6514_v13, %v3994_v52  ;;  %5204 = vmatprep.mubr.msk.f32.mxu1 %vm4256_vm2, %v4240_v3  ;;  %v7518_v52 = vld [vmem:[#allocation96_spill] sm:$0xff] }
 0x2fb   :  { %v3702_v40 = vmul.f32 %v6498_v31, %v7513_v19  ;;  %v3929_v25 = vadd.f32 %v3897_v45, %v3733_v12  ;;  %v3750_v35 = vadd.f32 %v3718_v4, %v3554_v60  ;;  %v7523_v45 = vld [vmem:[#allocation69_spill] sm:$0xff]  ;;  %v3915_v4 = vmul.f32 %v6505_v54, %v6858_v9  ;;  %v7526_v19 = vld [vmem:[#allocation98_spill] sm:$0xff]  ;;  %v7529_v9 = vld [vmem:[#allocation67_spill] sm:$0xff] }
 0x2fc   :  { %v4190_v55 = vadd.f32 %v6711_v10, %v4154_v27  ;;  %v4141_v32 = vadd.f32 %v4109_v14, %v3945_v15  ;;  %v4123_v42 = vadd.f32 %v4091_v6, %v3927_v8  ;;  %5175 = vmatmul.mubr.msk.f32.gmra.mxu0 %vm4256_vm2, %v4221_v49  ;;  %v7517_v8 = vld [vmem:[#allocation70_spill] sm:$0xff]  ;;  %v7519_v49 = vld [vmem:[#allocation37_spill] sm:$0xff] }
 0x2fd   :  { %v3998_v22 = vpop.permute.xlu0 %3997  ;;  %v3703_v61 = vmul.f32 %v6498_v31, %v7517_v8  ;;  %v3734_v15 = vadd.f32 %v3702_v40, %v3538_v36  ;;  %v3373_v27 = vsel %vm3359_vm1, %v7519_v49, %v7518_v52  ;;  %v7527_v40 = vld [vmem:[#allocation41_spill] sm:$0xff] }
 0x2fe   :  { %v4222_v24 = vmax.f32 %v4190_v55, 0.0  ;;  %v4173_v17 = vadd.f32 %v4141_v32, %v3389_v11  ;;  %v4155_v59 = vadd.f32 %v4123_v42, %v3371_v34  ;;  %v4092_v51 = vmul.f32 %v6514_v13, %v3998_v22  ;;  %v3874_v56 = vpop.permute.xlu1 %3873 }
 0x2ff   :  { %v3914_v20 = vmul.f32 %v6505_v54, %v3874_v56  ;;  %v3930_v55 = vadd.f32 %v3898_v21, %v3734_v15  ;;  %v3719_v32 = vmul.f32 %v6498_v31, %v7052_v26  ;;  %v3555_v11 = vmul.f32 %v7490_v16, %v7521_v58 }
 0x300   :  { %v4209_v1 = vadd.f32 %v6711_v10, %v4173_v17  ;;  %v4191_v53 = vadd.f32 %v6711_v10, %v4155_v59  ;;  %v4124_v28 = vadd.f32 %v4092_v51, %v3928_v23  ;;  %5177 = vmatprep.mubr.msk.f32.mxu0 %vm4256_vm2, %v4222_v24  ;;  %v7522_v23 = vld [vmem:[#allocation107_spill] sm:$0xff]  ;;  %v3735_v24 = vadd.f32 %v3703_v61, %v3539_v50  ;;  %v7525_v51 = vld [vmem:[#allocation44_spill] sm:$0xff] }
 0x301   :  { %v4002_v62 = vpop.permute.xlu0 %4001  ;;  %v3946_v48 = vadd.f32 %v3914_v20, %v3750_v35  ;;  %v3390_v22 = vsel %vm3359_vm1, %v7523_v45, %v7522_v23  ;;  %v7524_v59 = vld [vmem:[#allocation99_spill] sm:$0xff]  ;;  %v3751_v18 = vadd.f32 %v3719_v32, %v3555_v11  ;;  %v3375_v2 = vsel %vm3359_vm1, %v7527_v40, %v7526_v19 }
 0x302   :  { %v4241_v57 = vmax.f32 %v4209_v1, 0.0  ;;  %v4223_v46 = vmax.f32 %v4191_v53, 0.0  ;;  %v4156_v3 = vadd.f32 %v4124_v28, %v3372_v33  ;;  %v4093_v7 = vmul.f32 %v6514_v13, %v4002_v62  ;;  %v3814_v30 = vpop.permute.xlu1 %3813 }
 0x303   :  { %v3899_v38 = vmul.f32 %v6505_v54, %v3814_v30  ;;  %v3374_v56 = vsel %vm3359_vm1, %v7525_v51, %v7524_v59  ;;  %v3947_v20 = vadd.f32 %v3915_v4, %v3751_v18  ;;  %v7528_v54 = vld [vmem:[#allocation106_spill] sm:$0xff] }
 0x304   :  { %v4192_v44 = vadd.f32 %v6711_v10, %v4156_v3  ;;  %v4125_v43 = vadd.f32 %v4093_v7, %v3929_v25  ;;  %5178 = vmatmul.mubr.msk.f32.gmra.mxu0 %vm4256_vm2, %v4223_v46  ;;  %5205 = vmatmul.mubr.msk.f32.gmra.mxu1 %vm4256_vm2, %v4241_v57  ;;  %v3391_v3 = vsel %vm3359_vm1, %v7529_v9, %v7528_v54 }
 0x305   :  { %v4070_v14 = vpop.permute.xlu0 %4069  ;;  %v3931_v63 = vadd.f32 %v3899_v38, %v3735_v24 }
 0x306   :  { %v4224_v6 = vmax.f32 %v4192_v44, 0.0  ;;  %v4157_v37 = vadd.f32 %v4125_v43, %v3373_v27  ;;  %v4110_v47 = vmul.f32 %v6514_v13, %v4070_v14  ;;  %v5311_v44 = vld [vmem:[%s7233_s3] sm:$0xff]  ;;  %s5342_s3 = smov [#allocation2]  }
 0x307   :  { %v4006_v42 = vpop.permute.xlu1 %4005  ;;  %s4647_s15 = sshll.u32 %s5342_s3, 4  ;;  %s4648_s15 = int_to_ptr.vmem [resolvable:$true] %s4647_s15 }
 0x308   :  { %v4193_v29 = vadd.f32 %v6711_v10, %v4157_v37  ;;  %v4142_v34 = vadd.f32 %v4110_v47, %v3946_v48  ;;  %v4094_v0 = vmul.f32 %v6514_v13, %v4006_v42  ;;  %5180 = vmatprep.mubr.msk.f32.mxu0 %vm4256_vm2, %v4224_v6  ;;  %s5312_s16 = scalar_lea.vmem %s4648_s15, 4096  ;;  %p5317_p1 = scmp.lt.s32.totalorder %s4648_s15, %s4648_s15 }
 0x309   :  { %p5313_p0 = scmp.ne.s32.totalorder %s4648_s15, %s5312_s16  ;;  %p5318_p2 = scmp.lt.s32.totalorder %s5312_s16, %s5312_s16 }
 0x30a   :  { %v4225_v17 = vmax.f32 %v4193_v29, 0.0  ;;  %v4174_v31 = vadd.f32 %v4142_v34, %v3390_v22  ;;  %v4126_v26 = vadd.f32 %v4094_v0, %v3930_v55 }
 0x30b   :  { %v4010_v36 = vpop.permute.xlu1 %4009  ;;  %p5319_p3 = por %p5318_p2, %p5317_p1 }
 0x30c   :  { %v4210_v60 = vadd.f32 %v6711_v10, %v4174_v31  ;;  %v4158_v12 = vadd.f32 %v4126_v26, %v3374_v56  ;;  %v4095_v16 = vmul.f32 %v6514_v13, %v4010_v36  ;;  %5181 = vmatmul.mubr.msk.f32.gmra.mxu0 %vm4256_vm2, %v4225_v17 }
 0x30d   :  { %p5320_p4 = pnand %p5319_p3, %p5313_p0 }
 0x30e   :  { %v4242_v1 = vmax.f32 %v4210_v60, 0.0  ;;  %v4194_v53 = vadd.f32 %v6711_v10, %v4158_v12  ;;  %v4127_v28 = vadd.f32 %v4095_v16, %v3931_v63 }
 0x30f   :  { %v4074_v5 = vpop.permute.xlu1 %4073 }
 0x310   :  { %v4226_v33 = vmax.f32 %v4194_v53, 0.0  ;;  %v4159_v25 = vadd.f32 %v4127_v28, %v3375_v2  ;;  %v4111_v62 = vmul.f32 %v6514_v13, %v4074_v5  ;;  %5207 = vmatprep.mubr.msk.f32.mxu1 %vm4256_vm2, %v4242_v1  ;;  %v7530_v13 = vld [vmem:[#allocation21_spill] sm:$0xff] }
 0x311   :  { %v4254_v35 = vsub.s32 7, %v7530_v13 }
 0x312   :  { %v4195_v57 = vadd.f32 %v6711_v10, %v4159_v25  ;;  %v4143_v46 = vadd.f32 %v4111_v62, %v3947_v20  ;;  %5183 = vmatprep.mubr.msk.f32.mxu0 %vm4256_vm2, %v4226_v33 }
 0x313   :  { %v7161_v43 = vrot.slane %v5311_v44, %v4254_v35 }
 0x314   :  { %v4227_v7 = vmax.f32 %v4195_v57, 0.0  ;;  %v4175_v30 = vadd.f32 %v4143_v46, %v3391_v3 }
 0x316   :  { %v4211_v41 = vadd.f32 %v6711_v10, %v4175_v30  ;;  %5184 = vmatmul.mubr.msk.f32.gmra.mxu0 %vm4256_vm2, %v4227_v7 }
 0x318   :  { %v4243_v21 = vmax.f32 %v4211_v41, 0.0 }
 0x31a   :  { %5208 = vmatmul.mubr.msk.f32.gmra.mxu1 %vm4256_vm2, %v4243_v21 }
 0x39d   :  { %v5164_v8 = vpop.f32.mrf.mxu0 }
 0x39e   :  { %v4425_v61 = vadd.f32 %v5164_v8, %v7161_v43 }
 0x39f   :  { %v4419_v15 = vpop.f32.mrf.mxu0 }
 0x3a0   :  { %v4579_v52 = vmax.f32 %v4425_v61, 0.0  ;;  %v4420_v10 = vadd.f32 %v4419_v15, %v7161_v43  ;;  %v5188_v49 = vpop.f32.mrf.mxu1 }
 0x3a1   :  { %v4505_v27 = vadd.f32 %v5188_v49, %v7161_v43  ;;  %v5167_v14 = vpop.f32.mrf.mxu0 }
 0x3a2   :  { %4611 = vst.msk [vmem:[#allocation2 + $0x8] sm:$0xff] %vm3359_vm1, %v4579_v52  ;;  %v4578_v6 = vmax.f32 %v4420_v10, 0.0  ;;  %v4435_v48 = vadd.f32 %v5167_v14, %v7161_v43  ;;  %v4499_v37 = vpop.f32.mrf.mxu1 }
 0x3a3   :  { %v4595_v47 = vmax.f32 %v4505_v27, 0.0  ;;  %v4500_v39 = vadd.f32 %v4499_v37, %v7161_v43  ;;  %v4429_v50 = vpop.f32.mrf.mxu0 }
 0x3a4   :  { %4610 = vst.msk [vmem:[#allocation2] sm:$0xff] %vm3359_vm1, %v4578_v6  ;;  %v4581_v55 = vmax.f32 %v4435_v48, 0.0  ;;  %v4430_v32 = vadd.f32 %v4429_v50, %v7161_v43  ;;  %v5191_v42 = vpop.f32.mrf.mxu1 }
 0x3a5   :  { %4627 = vst.msk [vmem:[#allocation2 + $0x88] sm:$0xff] %vm3359_vm1, %v4595_v47  ;;  %v4594_v29 = vmax.f32 %v4500_v39, 0.0  ;;  %v4515_v38 = vadd.f32 %v5191_v42, %v7161_v43 }
 0x3a6   :  { %4613 = vst.msk [vmem:[#allocation2 + $0x18] sm:$0xff] %vm3359_vm1, %v4581_v55  ;;  %v4580_v34 = vmax.f32 %v4430_v32, 0.0  ;;  %v4509_v0 = vpop.f32.mrf.mxu1 }
 0x3a7   :  { %4626 = vst.msk [vmem:[#allocation2 + $0x80] sm:$0xff] %vm3359_vm1, %v4594_v29  ;;  %v4597_v58 = vmax.f32 %v4515_v38, 0.0  ;;  %v4510_v11 = vadd.f32 %v4509_v0, %v7161_v43 }
 0x3a8   :  { %4612 = vst.msk [vmem:[#allocation2 + $0x10] sm:$0xff] %vm3359_vm1, %v4580_v34  ;;  %v5194_v23 = vpop.f32.mrf.mxu1 }
 0x3a9   :  { %4629 = vst.msk [vmem:[#allocation2 + $0x98] sm:$0xff] %vm3359_vm1, %v4597_v58  ;;  %v4596_v45 = vmax.f32 %v4510_v11, 0.0  ;;  %v4525_v22 = vadd.f32 %v5194_v23, %v7161_v43 }
 0x3aa   :  { %v4519_v24 = vpop.f32.mrf.mxu1 }
 0x3ab   :  { %4628 = vst.msk [vmem:[#allocation2 + $0x90] sm:$0xff] %vm3359_vm1, %v4596_v45  ;;  %v4599_v17 = vmax.f32 %v4525_v22, 0.0  ;;  %v4520_v31 = vadd.f32 %v4519_v24, %v7161_v43 }
 0x3ac   :  { %v5170_v26 = vpop.f32.mrf.mxu0  ;;  %v5197_v59 = vpop.f32.mrf.mxu1 }
 0x3ad   :  { %4631 = vst.msk [vmem:[#allocation2 + $0xa8] sm:$0xff] %vm3359_vm1, %v4599_v17  ;;  %v4598_v51 = vmax.f32 %v4520_v31, 0.0  ;;  %v4445_v56 = vadd.f32 %v5170_v26, %v7161_v43  ;;  %v4535_v18 = vadd.f32 %v5197_v59, %v7161_v43 }
 0x3ae   :  { %v4439_v36 = vpop.f32.mrf.mxu0  ;;  %v4529_v63 = vpop.f32.mrf.mxu1 }
 0x3af   :  { %4630 = vst.msk [vmem:[#allocation2 + $0xa0] sm:$0xff] %vm3359_vm1, %v4598_v51  ;;  %v4583_v60 = vmax.f32 %v4445_v56, 0.0  ;;  %v4601_v12 = vmax.f32 %v4535_v18, 0.0  ;;  %v4440_v16 = vadd.f32 %v4439_v36, %v7161_v43  ;;  %v4530_v4 = vadd.f32 %v4529_v63, %v7161_v43 }
 0x3b0   :  { %v5200_v1 = vpop.f32.mrf.mxu1 }
 0x3b1   :  { %4615 = vst.msk [vmem:[#allocation2 + $0x28] sm:$0xff] %vm3359_vm1, %v4583_v60  ;;  %4633 = vst.msk [vmem:[#allocation2 + $0xb8] sm:$0xff] %vm3359_vm1, %v4601_v12  ;;  %v4582_v53 = vmax.f32 %v4440_v16, 0.0  ;;  %v4600_v28 = vmax.f32 %v4530_v4, 0.0  ;;  %v4545_v19 = vadd.f32 %v5200_v1, %v7161_v43 }
 0x3b2   :  { %v4539_v40 = vpop.f32.mrf.mxu1 }
 0x3b3   :  { %4614 = vst.msk [vmem:[#allocation2 + $0x20] sm:$0xff] %vm3359_vm1, %v4582_v53  ;;  %4632 = vst.msk [vmem:[#allocation2 + $0xb0] sm:$0xff] %vm3359_vm1, %v4600_v28  ;;  %v4603_v2 = vmax.f32 %v4545_v19, 0.0  ;;  %v4540_v5 = vadd.f32 %v4539_v40, %v7161_v43 }
 0x3b4   :  { %v5173_v33 = vpop.f32.mrf.mxu0  ;;  %v5203_v25 = vpop.f32.mrf.mxu1 }
 0x3b5   :  { %4635 = vst.msk [vmem:[#allocation2 + $0xc8] sm:$0xff] %vm3359_vm1, %v4603_v2  ;;  %v4602_v20 = vmax.f32 %v4540_v5, 0.0  ;;  %v4455_v62 = vadd.f32 %v5173_v33, %v7161_v43  ;;  %v4555_v57 = vadd.f32 %v5203_v25, %v7161_v43 }
 0x3b6   :  { %v4449_v46 = vpop.f32.mrf.mxu0  ;;  %v4549_v54 = vpop.f32.mrf.mxu1 }
 0x3b7   :  { %4634 = vst.msk [vmem:[#allocation2 + $0xc0] sm:$0xff] %vm3359_vm1, %v4602_v20  ;;  %v4585_v9 = vmax.f32 %v4455_v62, 0.0  ;;  %v4605_v3 = vmax.f32 %v4555_v57, 0.0  ;;  %v4450_v7 = vadd.f32 %v4449_v46, %v7161_v43  ;;  %v4550_v30 = vadd.f32 %v4549_v54, %v7161_v43 }
 0x3b9   :  { %4617 = vst.msk [vmem:[#allocation2 + $0x38] sm:$0xff] %vm3359_vm1, %v4585_v9  ;;  %4637 = vst.msk [vmem:[#allocation2 + $0xd8] sm:$0xff] %vm3359_vm1, %v4605_v3  ;;  %v4584_v41 = vmax.f32 %v4450_v7, 0.0  ;;  %v4604_v21 = vmax.f32 %v4550_v30, 0.0 }
 0x3bb   :  { %4616 = vst.msk [vmem:[#allocation2 + $0x30] sm:$0xff] %vm3359_vm1, %v4584_v41  ;;  %4636 = vst.msk [vmem:[#allocation2 + $0xd0] sm:$0xff] %vm3359_vm1, %v4604_v21 }
 0x3bc   :  { %v5176_v13 = vpop.f32.mrf.mxu0 }
 0x3bd   :  { %v4465_v35 = vadd.f32 %v5176_v13, %v7161_v43 }
 0x3be   :  { %v4459_v44 = vpop.f32.mrf.mxu0 }
 0x3bf   :  { %v4587_v8 = vmax.f32 %v4465_v35, 0.0  ;;  %v4460_v61 = vadd.f32 %v4459_v44, %v7161_v43 }
 0x3c1   :  { %4619 = vst.msk [vmem:[#allocation2 + $0x48] sm:$0xff] %vm3359_vm1, %v4587_v8  ;;  %v4586_v15 = vmax.f32 %v4460_v61, 0.0 }
 0x3c3   :  { %4618 = vst.msk [vmem:[#allocation2 + $0x40] sm:$0xff] %vm3359_vm1, %v4586_v15 }
 0x3c4   :  { %v5179_v52 = vpop.f32.mrf.mxu0  ;;  %v5206_v10 = vpop.f32.mrf.mxu1 }
 0x3c5   :  { %v4475_v49 = vadd.f32 %v5179_v52, %v7161_v43  ;;  %v4565_v27 = vadd.f32 %v5206_v10, %v7161_v43 }
 0x3c6   :  { %v4469_v14 = vpop.f32.mrf.mxu0  ;;  %v4559_v6 = vpop.f32.mrf.mxu1 }
 0x3c7   :  { %v4589_v48 = vmax.f32 %v4475_v49, 0.0  ;;  %v4607_v37 = vmax.f32 %v4565_v27, 0.0  ;;  %v4470_v47 = vadd.f32 %v4469_v14, %v7161_v43  ;;  %v4560_v39 = vadd.f32 %v4559_v6, %v7161_v43 }
 0x3c9   :  { %4621 = vst.msk [vmem:[#allocation2 + $0x58] sm:$0xff] %vm3359_vm1, %v4589_v48  ;;  %4639 = vst.msk [vmem:[#allocation2 + $0xe8] sm:$0xff] %vm3359_vm1, %v4607_v37  ;;  %v4588_v50 = vmax.f32 %v4470_v47, 0.0  ;;  %v4606_v55 = vmax.f32 %v4560_v39, 0.0 }
 0x3cb   :  { %4620 = vst.msk [vmem:[#allocation2 + $0x50] sm:$0xff] %vm3359_vm1, %v4588_v50  ;;  %4638 = vst.msk [vmem:[#allocation2 + $0xe0] sm:$0xff] %vm3359_vm1, %v4606_v55 }
 0x3cc   :  { %v5182_v32 = vpop.f32.mrf.mxu0 }
 0x3cd   :  { %v4485_v42 = vadd.f32 %v5182_v32, %v7161_v43 }
 0x3ce   :  { %v4479_v29 = vpop.f32.mrf.mxu0 }
 0x3cf   :  { %v4591_v38 = vmax.f32 %v4485_v42, 0.0  ;;  %v4480_v34 = vadd.f32 %v4479_v29, %v7161_v43 }
 0x3d1   :  { %4623 = vst.msk [vmem:[#allocation2 + $0x68] sm:$0xff] %vm3359_vm1, %v4591_v38  ;;  %v4590_v0 = vmax.f32 %v4480_v34, 0.0 }
 0x3d3   :  { %4622 = vst.msk [vmem:[#allocation2 + $0x60] sm:$0xff] %vm3359_vm1, %v4590_v0 }
 0x3d6   :  { %v5185_v58 = vpop.f32.mrf.mxu0 }
 0x3d7   :  { %v4495_v11 = vadd.f32 %v5185_v58, %v7161_v43 }
 0x3d8   :  { %v4489_v23 = vpop.f32.mrf.mxu0 }
 0x3d9   :  { %v4593_v45 = vmax.f32 %v4495_v11, 0.0  ;;  %v4490_v22 = vadd.f32 %v4489_v23, %v7161_v43 }
 0x3da   :  { %v5209_v24 = vpop.f32.mrf.mxu1 }
 0x3db   :  { %4625 = vst.msk [vmem:[#allocation2 + $0x78] sm:$0xff] %vm3359_vm1, %v4593_v45  ;;  %v4592_v17 = vmax.f32 %v4490_v22, 0.0  ;;  %v4575_v31 = vadd.f32 %v5209_v24, %v7161_v43 }
 0x3dc   :  { %v4569_v26 = vpop.f32.mrf.mxu1 }
 0x3dd   :  { %4624 = vst.msk [vmem:[#allocation2 + $0x70] sm:$0xff] %vm3359_vm1, %v4592_v17  ;;  %v4609_v59 = vmax.f32 %v4575_v31, 0.0  ;;  %v4570_v51 = vadd.f32 %v4569_v26, %v7161_v43 }
 0x3df   :  { %4641 = vst.msk [vmem:[#allocation2 + $0xf8] sm:$0xff] %vm3359_vm1, %v4609_v59  ;;  %v4608_v56 = vmax.f32 %v4570_v51, 0.0 }
 0x3e1   :  { %4640 = vst.msk [vmem:[#allocation2 + $0xf0] sm:$0xff] %vm3359_vm1, %v4608_v56 }
 0x3e2   :  { %5323 = shalt.err (!%p5320_p4)
}
 0x3e3   :  { %s5343_s17 = smov 128   ;;  %s5344_s18 = smov 8  }
 0x3e4   :  { %4653 = dma.vmem_to_hbm [thread:$0]  %s4648_s15, 4096, %s7235_s5, [#allocation3], %s5343_s17, %s5343_s17, %s5344_s18  }
 0x3e5   :  { %5332 = dma.done.wait [#allocation3], 4096  }
 0x3e6   :  { %5333 = vsyncadd [#allocation3], 4294963200 }
 0x3e7   :  { %4657 = vsyncpa [#allocation3], 1 }

</bundles_post_ra>
